<compile_context>
chip_gen: v7x
topology: tpu7x:2x2x1
jax: 0.10.0
libtpu: 0.0.40
codegen_flags: <defaults>
</compile_context>

<pallas_src>
import math
from functools import partial

import numpy as np
import jax
import jax.numpy as jnp
from jax.experimental import pallas as pl
from jax.experimental.pallas import tpu as pltpu


def _dft_matrices(N):
    """Forward DFT matrices and roll-fused (unscaled) inverse-DFT matrices (np.float64)."""
    n = np.arange(N, dtype=np.float64)
    ang = 2.0 * np.pi * np.outer(n, n) / N          # [n, k] -> 2*pi*n*k/N
    Fr = np.cos(ang)                                 # Re(e^{-i 2pi nk/N})
    Fi = -np.sin(ang)                                # Im(e^{-i 2pi nk/N})
    # real(IFFT) fused with torch.roll(flat, 1):
    # S[n] = (1/N) sum_k [ Pr[k] cos(2*pi*k*((n-1)%N)/N) - Pi[k] sin(...) ]
    # The 1/N is applied in f32 after the matmul (Gc/Gs here are unscaled).
    k = np.arange(N, dtype=np.float64)
    n_roll = ((np.arange(N) - 1) % N).astype(np.float64)
    ang2 = 2.0 * np.pi * np.outer(k, n_roll) / N
    Gc = np.cos(ang2)
    Gs = np.sin(ang2)
    return Fr, Fi, Gc, Gs


def _fftconv_kernel(x_ref, fr_ref, fi_ref, gc_ref, gs_ref, wr_ref, wi_ref,
                    bias_ref, out_ref, *, thresh, n):
    # x_ref  : (1, C, N)   padded, flattened input for batch b   (f32)
    # fr/fi  : (N, N)      forward DFT matrices                   (bf16)
    # gc/gs  : (N, N)      roll-fused inverse-DFT (unscaled)      (bf16)
    # wr/wi  : (OC, C, N)  precomputed weight spectra             (f32)
    # bias   : (OC, 1)                                            (f32)
    # out    : (1, OC, N)
    x = x_ref[0].astype(jnp.bfloat16)                          # (C, N)

    # Forward DFT of the input: bf16 MXU matmuls with f32 accumulation.
    xr = jnp.dot(x, fr_ref[...], preferred_element_type=jnp.float32)   # (C, N)
    xi = jnp.dot(x, fi_ref[...], preferred_element_type=jnp.float32)   # (C, N)

    # Hard threshold on |Re(X)| (computed on the f32 accumulator output);
    # zero both real and imag parts of dropped bins.
    keep = jnp.abs(xr) >= thresh
    xr = jnp.where(keep, xr, 0.0)
    xi = jnp.where(keep, xi, 0.0)

    # Complex product with the precomputed weight spectra and channel reduction.
    # The channel sum commutes with the inverse DFT, so reduce BEFORE the matmul
    # (it must stay after the elementwise X*W product, which it does).
    wr = wr_ref[...]                                           # (OC, C, N) f32
    wi = wi_ref[...]
    pr = jnp.sum(xr[None, :, :] * wr - xi[None, :, :] * wi, axis=1)   # (OC, N)
    pi = jnp.sum(xr[None, :, :] * wi + xi[None, :, :] * wr, axis=1)   # (OC, N)

    # real(IFFT) with the flat roll-by-1 baked into Gc/Gs columns.
    yr = jnp.dot(pr.astype(jnp.bfloat16), gc_ref[...],
                 preferred_element_type=jnp.float32)           # (OC, N)
    yi = jnp.dot(pi.astype(jnp.bfloat16), gs_ref[...],
                 preferred_element_type=jnp.float32)           # (OC, N)

    out_ref[0] = (yr - yi) * (1.0 / n) + bias_ref[...]


def fft_conv2d_thresh(x, weight, bias, padding, stride, thresh):
    """Pallas implementation of FFTConv1d_thresh.forward."""
    B, C, H, W = x.shape
    OC, C_w, KH, KW = weight.shape
    assert C == C_w
    # PyTorch: nn.ZeroPad2d((p0, p0, p1, p1)) pads cols by padding[0], rows by padding[1]
    pw, ph = padding[0], padding[1]
    x_pad = jnp.pad(x, ((0, 0), (0, 0), (ph, ph), (pw, pw)))
    Hp, Wp = H + 2 * ph, W + 2 * pw
    N = Hp * Wp
    x_flat = x_pad.reshape(B, C, N).astype(jnp.float32)

    # get_Wfft: pad weight bottom/right to (Hp, Wp), flatten, flip flat axis
    # (the flips along dims [0,1] cancel in the reference code).
    w_pad = jnp.pad(weight, ((0, 0), (0, 0), (0, Hp - KH), (0, Wp - KW)))
    w_rev = w_pad.reshape(OC, C, N)[:, :, ::-1].astype(jnp.float32)

    Fr, Fi, Gc, Gs = _dft_matrices(N)

    # Weight spectra hoisted out of the kernel (depend only on the weights), f32.
    Fr32 = jnp.asarray(Fr, jnp.float32)
    Fi32 = jnp.asarray(Fi, jnp.float32)
    w_r = jnp.einsum('ocn,nk->ock', w_rev, Fr32)               # (OC, C, N)
    w_i = jnp.einsum('ocn,nk->ock', w_rev, Fi32)               # (OC, C, N)

    # bf16 DFT matrices for the in-kernel MXU matmuls (f32 accumulation in-kernel).
    Fr_b = jnp.asarray(Fr, jnp.bfloat16)
    Fi_b = jnp.asarray(Fi, jnp.bfloat16)
    Gc_b = jnp.asarray(Gc, jnp.bfloat16)
    Gs_b = jnp.asarray(Gs, jnp.bfloat16)

    bias2 = bias.reshape(OC, 1).astype(jnp.float32)

    kernel = partial(_fftconv_kernel, thresh=float(thresh), n=N)
    out_flat = pl.pallas_call(
        kernel,
        out_shape=jax.ShapeDtypeStruct((B, OC, N), jnp.float32),
        grid=(B,),
        in_specs=[
            pl.BlockSpec((1, C, N), lambda b: (b, 0, 0)),       # x per batch
            pl.BlockSpec((N, N), lambda b: (0, 0)),             # Fr (bf16)
            pl.BlockSpec((N, N), lambda b: (0, 0)),             # Fi (bf16)
            pl.BlockSpec((N, N), lambda b: (0, 0)),             # Gc (bf16)
            pl.BlockSpec((N, N), lambda b: (0, 0)),             # Gs (bf16)
            pl.BlockSpec((OC, C, N), lambda b: (0, 0, 0)),      # weight spectrum (real)
            pl.BlockSpec((OC, C, N), lambda b: (0, 0, 0)),      # weight spectrum (imag)
            pl.BlockSpec((OC, 1), lambda b: (0, 0)),            # bias
        ],
        out_specs=pl.BlockSpec((1, OC, N), lambda b: (b, 0, 0)),
        compiler_params=pltpu.CompilerParams(
            dimension_semantics=("parallel",),
            vmem_limit_bytes=48 * 1024 * 1024),
    )(x_flat, Fr_b, Fi_b, Gc_b, Gs_b, w_r, w_i, bias2)

    # stride subsample + crop (same as y[::s0, ::s1][:ans_row, :ans_col] in torch)
    s0, s1 = stride
    ans_row = math.ceil((Hp - KH + 1) / s0)
    ans_col = math.ceil((Wp - KW + 1) / s1)
    out = out_flat.reshape(B, OC, Hp, Wp)[:, :, ::s0, ::s1][:, :, :ans_row, :ans_col]
    return out


def fft_conv2d_thresh_reference(x, weight, bias, padding, stride, thresh):
    """Pure-JAX f32 reference using the same DFT-as-matmul math (for verification)."""
    B, C, H, W = x.shape
    OC, _, KH, KW = weight.shape
    pw, ph = padding[0], padding[1]
    x_pad = jnp.pad(x, ((0, 0), (0, 0), (ph, ph), (pw, pw)))
    Hp, Wp = H + 2 * ph, W + 2 * pw
    N = Hp * Wp
    x_flat = x_pad.reshape(B, C, N).astype(jnp.float32)
    w_pad = jnp.pad(weight, ((0, 0), (0, 0), (0, Hp - KH), (0, Wp - KW)))
    w_rev = w_pad.reshape(OC, C, N)[:, :, ::-1].astype(jnp.float32)
    Fr, Fi, Gc, Gs = _dft_matrices(N)
    Fr = jnp.asarray(Fr, jnp.float32)
    Fi = jnp.asarray(Fi, jnp.float32)
    Gr = jnp.asarray(Gc / N, jnp.float32)
    Gi = jnp.asarray(Gs / N, jnp.float32)

    Xr = jnp.einsum('bcn,nk->bck', x_flat, Fr)
    Xi = jnp.einsum('bcn,nk->bck', x_flat, Fi)
    keep = jnp.abs(Xr) >= thresh
    Xr = jnp.where(keep, Xr, 0.0)
    Xi = jnp.where(keep, Xi, 0.0)
    Wr = jnp.einsum('ocn,nk->ock', w_rev, Fr)
    Wi = jnp.einsum('ocn,nk->ock', w_rev, Fi)
    Pr = jnp.einsum('bck,ock->bok', Xr, Wr) - jnp.einsum('bck,ock->bok', Xi, Wi)
    Pi = jnp.einsum('bck,ock->bok', Xr, Wi) + jnp.einsum('bck,ock->bok', Xi, Wr)
    S = (jnp.einsum('bok,kn->bon', Pr, Gr)
         - jnp.einsum('bok,kn->bon', Pi, Gi)) + bias[None, :, None]
    s0, s1 = stride
    ans_row = math.ceil((Hp - KH + 1) / s0)
    ans_col = math.ceil((Wp - KW + 1) / s1)
    return S.reshape(B, OC, Hp, Wp)[:, :, ::s0, ::s1][:, :, :ans_row, :ans_col]


if __name__ == "__main__":
    key = jax.random.PRNGKey(0)
    kx, kw, kb = jax.random.split(key, 3)

    # Small GoogLeNet-style conv: 3x3, padding 1, stride 1.
    B, C, H, W = 2, 4, 16, 16
    OC, KH, KW = 4, 3, 3
    padding = (1, 1)
    stride = (1, 1)
    thresh = 0.5

    x = jax.random.normal(kx, (B, C, H, W), dtype=jnp.float32)
    weight = 0.1 * jax.random.normal(kw, (OC, C, KH, KW), dtype=jnp.float32)
    bias = 0.1 * jax.random.normal(kb, (OC,), dtype=jnp.float32)

    out = fft_conv2d_thresh(x, weight, bias, padding, stride, thresh)
    out = jax.block_until_ready(out)

    ref = fft_conv2d_thresh_reference(x, weight, bias, padding, stride, thresh)
    ref = jax.block_until_ready(ref)

    assert out.shape == (B, OC, 16, 16), out.shape
    np.testing.assert_allclose(np.asarray(out), np.asarray(ref),
                               rtol=5e-2, atol=5e-2)
    print("KERNEL_OK")
</pallas_src>

<mosaic_0001>
module attributes {stable_mosaic.version = 11 : i64} {
  func.func @_fftconv_kernel(%arg0: i32, %arg1: memref<1x4x324xf32, #tpu.memory_space<vmem>>, %arg2: memref<324x324xbf16, #tpu.memory_space<vmem>>, %arg3: memref<324x324xbf16, #tpu.memory_space<vmem>>, %arg4: memref<324x324xbf16, #tpu.memory_space<vmem>>, %arg5: memref<324x324xbf16, #tpu.memory_space<vmem>>, %arg6: memref<4x4x324xf32, #tpu.memory_space<vmem>>, %arg7: memref<4x4x324xf32, #tpu.memory_space<vmem>>, %arg8: memref<4x1xf32, #tpu.memory_space<vmem>>, %arg9: memref<1x4x324xf32, #tpu.memory_space<vmem>>) attributes {dimension_semantics = [#tpu.dimension_semantics<parallel>], iteration_bounds = array<i64: 2>, scalar_prefetch = 0 : i64, scratch_operands = 0 : i64, tpu.core_type = #tpu.core_type<tc>, window_params = [{transform_indices = @transform_0, window_bounds = array<i64: 1, 4, 324>}, {pipeline_mode = #tpu.pipeline_mode<synchronous>, transform_indices = @transform_1, window_bounds = array<i64: 324, 324>}, {pipeline_mode = #tpu.pipeline_mode<synchronous>, transform_indices = @transform_2, window_bounds = array<i64: 324, 324>}, {pipeline_mode = #tpu.pipeline_mode<synchronous>, transform_indices = @transform_3, window_bounds = array<i64: 324, 324>}, {pipeline_mode = #tpu.pipeline_mode<synchronous>, transform_indices = @transform_4, window_bounds = array<i64: 324, 324>}, {pipeline_mode = #tpu.pipeline_mode<synchronous>, transform_indices = @transform_5, window_bounds = array<i64: 4, 4, 324>}, {pipeline_mode = #tpu.pipeline_mode<synchronous>, transform_indices = @transform_6, window_bounds = array<i64: 4, 4, 324>}, {pipeline_mode = #tpu.pipeline_mode<synchronous>, transform_indices = @transform_7, window_bounds = array<i64: 4, 1>}, {transform_indices = @transform_8, window_bounds = array<i64: 1, 4, 324>}]} {
    %c0 = arith.constant 0 : index
    %c0_0 = arith.constant 0 : index
    %c0_1 = arith.constant 0 : index
    %0 = vector.load %arg1[%c0, %c0_0, %c0_1] : memref<1x4x324xf32, #tpu.memory_space<vmem>>, vector<1x4x324xf32>
    %1 = vector.shape_cast %0 : vector<1x4x324xf32> to vector<4x324xf32>
    %2 = arith.truncf %1 : vector<4x324xf32> to vector<4x324xbf16>
    %c0_2 = arith.constant 0 : index
    %c0_3 = arith.constant 0 : index
    %3 = vector.load %arg2[%c0_2, %c0_3] : memref<324x324xbf16, #tpu.memory_space<vmem>>, vector<324x324xbf16>
    %cst = arith.constant dense<0.000000e+00> : vector<4x324xf32>
    %4 = tpu.matmul %2, %3, %cst {dimension_numbers = #tpu.dot_dimension_numbers<[1], [0], [0], [1], [0, 0, 1, 1], [], []>} : vector<4x324xbf16>, vector<324x324xbf16>, vector<4x324xf32> -> vector<4x324xf32>
    %c0_4 = arith.constant 0 : index
    %c0_5 = arith.constant 0 : index
    %5 = vector.load %arg3[%c0_4, %c0_5] : memref<324x324xbf16, #tpu.memory_space<vmem>>, vector<324x324xbf16>
    %cst_6 = arith.constant dense<0.000000e+00> : vector<4x324xf32>
    %6 = tpu.matmul %2, %5, %cst_6 {dimension_numbers = #tpu.dot_dimension_numbers<[1], [0], [0], [1], [0, 0, 1, 1], [], []>} : vector<4x324xbf16>, vector<324x324xbf16>, vector<4x324xf32> -> vector<4x324xf32>
    %7 = math.absf %4 : vector<4x324xf32>
    %cst_7 = arith.constant 5.000000e-01 : f32
    %8 = vector.broadcast %cst_7 : f32 to vector<4x324xf32>
    %9 = arith.cmpf oge, %7, %8 : vector<4x324xf32>
    %cst_8 = arith.constant 0.000000e+00 : f32
    %10 = vector.broadcast %cst_8 : f32 to vector<4x324xf32>
    %11 = arith.select %9, %4, %10 : vector<4x324xi1>, vector<4x324xf32>
    %cst_9 = arith.constant 0.000000e+00 : f32
    %12 = vector.broadcast %cst_9 : f32 to vector<4x324xf32>
    %13 = arith.select %9, %6, %12 : vector<4x324xi1>, vector<4x324xf32>
    %c0_10 = arith.constant 0 : index
    %c0_11 = arith.constant 0 : index
    %c0_12 = arith.constant 0 : index
    %14 = vector.load %arg6[%c0_10, %c0_11, %c0_12] : memref<4x4x324xf32, #tpu.memory_space<vmem>>, vector<4x4x324xf32>
    %c0_13 = arith.constant 0 : index
    %c0_14 = arith.constant 0 : index
    %c0_15 = arith.constant 0 : index
    %15 = vector.load %arg7[%c0_13, %c0_14, %c0_15] : memref<4x4x324xf32, #tpu.memory_space<vmem>>, vector<4x4x324xf32>
    %16 = vector.shape_cast %11 : vector<4x324xf32> to vector<1x4x324xf32>
    %17 = vector.broadcast %16 : vector<1x4x324xf32> to vector<4x4x324xf32>
    %18 = arith.mulf %17, %14 : vector<4x4x324xf32>
    %19 = vector.shape_cast %13 : vector<4x324xf32> to vector<1x4x324xf32>
    %20 = vector.broadcast %19 : vector<1x4x324xf32> to vector<4x4x324xf32>
    %21 = arith.mulf %20, %15 : vector<4x4x324xf32>
    %22 = arith.subf %18, %21 : vector<4x4x324xf32>
    %cst_16 = arith.constant dense<0.000000e+00> : vector<4x324xf32>
    %23 = vector.multi_reduction <add>, %22, %cst_16 [1] : vector<4x4x324xf32> to vector<4x324xf32>
    %24 = vector.shape_cast %11 : vector<4x324xf32> to vector<1x4x324xf32>
    %25 = vector.broadcast %24 : vector<1x4x324xf32> to vector<4x4x324xf32>
    %26 = arith.mulf %25, %15 : vector<4x4x324xf32>
    %27 = vector.shape_cast %13 : vector<4x324xf32> to vector<1x4x324xf32>
    %28 = vector.broadcast %27 : vector<1x4x324xf32> to vector<4x4x324xf32>
    %29 = arith.mulf %28, %14 : vector<4x4x324xf32>
    %30 = arith.addf %26, %29 : vector<4x4x324xf32>
    %cst_17 = arith.constant dense<0.000000e+00> : vector<4x324xf32>
    %31 = vector.multi_reduction <add>, %30, %cst_17 [1] : vector<4x4x324xf32> to vector<4x324xf32>
    %32 = arith.truncf %23 : vector<4x324xf32> to vector<4x324xbf16>
    %c0_18 = arith.constant 0 : index
    %c0_19 = arith.constant 0 : index
    %33 = vector.load %arg4[%c0_18, %c0_19] : memref<324x324xbf16, #tpu.memory_space<vmem>>, vector<324x324xbf16>
    %cst_20 = arith.constant dense<0.000000e+00> : vector<4x324xf32>
    %34 = tpu.matmul %32, %33, %cst_20 {dimension_numbers = #tpu.dot_dimension_numbers<[1], [0], [0], [1], [0, 0, 1, 1], [], []>} : vector<4x324xbf16>, vector<324x324xbf16>, vector<4x324xf32> -> vector<4x324xf32>
    %35 = arith.truncf %31 : vector<4x324xf32> to vector<4x324xbf16>
    %c0_21 = arith.constant 0 : index
    %c0_22 = arith.constant 0 : index
    %36 = vector.load %arg5[%c0_21, %c0_22] : memref<324x324xbf16, #tpu.memory_space<vmem>>, vector<324x324xbf16>
    %cst_23 = arith.constant dense<0.000000e+00> : vector<4x324xf32>
    %37 = tpu.matmul %35, %36, %cst_23 {dimension_numbers = #tpu.dot_dimension_numbers<[1], [0], [0], [1], [0, 0, 1, 1], [], []>} : vector<4x324xbf16>, vector<324x324xbf16>, vector<4x324xf32> -> vector<4x324xf32>
    %38 = arith.subf %34, %37 : vector<4x324xf32>
    %cst_24 = arith.constant 0.00308641978 : f32
    %39 = vector.broadcast %cst_24 : f32 to vector<4x324xf32>
    %40 = arith.mulf %38, %39 : vector<4x324xf32>
    %c0_25 = arith.constant 0 : index
    %c0_26 = arith.constant 0 : index
    %41 = vector.load %arg8[%c0_25, %c0_26] : memref<4x1xf32, #tpu.memory_space<vmem>>, vector<4x1xf32>
    %42 = vector.broadcast %41 : vector<4x1xf32> to vector<4x324xf32>
    %43 = arith.addf %40, %42 : vector<4x324xf32>
    %c0_27 = arith.constant 0 : index
    %c0_28 = arith.constant 0 : index
    %c0_29 = arith.constant 0 : index
    %44 = vector.load %arg9[%c0_27, %c0_28, %c0_29] : memref<1x4x324xf32, #tpu.memory_space<vmem>>, vector<1x4x324xf32>
    %45 = vector.shape_cast %44 : vector<1x4x324xf32> to vector<4x324xf32>
    %46 = vector.shape_cast %43 : vector<4x324xf32> to vector<1x4x324xf32>
    tpu.vector_store %arg9[%c0_27, %c0_28, %c0_29], %46 {strides = array<i32>} : memref<1x4x324xf32, #tpu.memory_space<vmem>>, vector<1x4x324xf32>,
    return
  }
  func.func @transform_0(%arg0: i32) -> (i32, i32, i32) {
    %c0_i32 = arith.constant 0 : i32
    %c0_i32_0 = arith.constant 0 : i32
    %c0_i32_1 = arith.constant 0 : i32
    return %arg0, %c0_i32, %c0_i32_0 : i32, i32, i32
  }
  func.func @transform_1(%arg0: i32) -> (i32, i32) {
    %c0_i32 = arith.constant 0 : i32
    %c0_i32_0 = arith.constant 0 : i32
    %c0_i32_1 = arith.constant 0 : i32
    return %c0_i32, %c0_i32_0 : i32, i32
  }
  func.func @transform_2(%arg0: i32) -> (i32, i32) {
    %c0_i32 = arith.constant 0 : i32
    %c0_i32_0 = arith.constant 0 : i32
    %c0_i32_1 = arith.constant 0 : i32
    return %c0_i32, %c0_i32_0 : i32, i32
  }
  func.func @transform_3(%arg0: i32) -> (i32, i32) {
    %c0_i32 = arith.constant 0 : i32
    %c0_i32_0 = arith.constant 0 : i32
    %c0_i32_1 = arith.constant 0 : i32
    return %c0_i32, %c0_i32_0 : i32, i32
  }
  func.func @transform_4(%arg0: i32) -> (i32, i32) {
    %c0_i32 = arith.constant 0 : i32
    %c0_i32_0 = arith.constant 0 : i32
    %c0_i32_1 = arith.constant 0 : i32
    return %c0_i32, %c0_i32_0 : i32, i32
  }
  func.func @transform_5(%arg0: i32) -> (i32, i32, i32) {
    %c0_i32 = arith.constant 0 : i32
    %c0_i32_0 = arith.constant 0 : i32
    %c0_i32_1 = arith.constant 0 : i32
    %c0_i32_2 = arith.constant 0 : i32
    return %c0_i32, %c0_i32_0, %c0_i32_1 : i32, i32, i32
  }
  func.func @transform_6(%arg0: i32) -> (i32, i32, i32) {
    %c0_i32 = arith.constant 0 : i32
    %c0_i32_0 = arith.constant 0 : i32
    %c0_i32_1 = arith.constant 0 : i32
    %c0_i32_2 = arith.constant 0 : i32
    return %c0_i32, %c0_i32_0, %c0_i32_1 : i32, i32, i32
  }
  func.func @transform_7(%arg0: i32) -> (i32, i32) {
    %c0_i32 = arith.constant 0 : i32
    %c0_i32_0 = arith.constant 0 : i32
    %c0_i32_1 = arith.constant 0 : i32
    return %c0_i32, %c0_i32_0 : i32, i32
  }
  func.func @transform_8(%arg0: i32) -> (i32, i32, i32) {
    %c0_i32 = arith.constant 0 : i32
    %c0_i32_0 = arith.constant 0 : i32
    %c0_i32_1 = arith.constant 0 : i32
    return %arg0, %c0_i32, %c0_i32_0 : i32, i32, i32
  }
}

</mosaic_0001>

<bundles_post_ra>
// kernel: tpu_custom_call.1
= control target key start
LH: loop header
LB: loop body
LE: loop exit
PB: predicated region body
PF: predicated region fallthrough
CT: control target
= control target key end

     0   :  { %s5324_s0 = inlined_call_operand.hbm [shape: f32[2,4,324], index: 0, kind: input, shape index: {}]   ;;  %s5325_s1 = inlined_call_operand.hbm [shape: bf16[324,324], index: 1, kind: input, shape index: {}]   ;;  %s5326_s2 = inlined_call_operand.hbm [shape: bf16[324,324], index: 2, kind: input, shape index: {}]   ;;  %s5327_s3 = inlined_call_operand.hbm [shape: bf16[324,324], index: 3, kind: input, shape index: {}]   ;;  %s5328_s4 = inlined_call_operand.hbm [shape: bf16[324,324], index: 4, kind: input, shape index: {}]   ;;  %s5329_s5 = inlined_call_operand.hbm [shape: f32[4,4,324], index: 5, kind: input, shape index: {}]   ;;  %s5330_s6 = inlined_call_operand.hbm [shape: f32[4,4,324], index: 6, kind: input, shape index: {}]   ;;  %s5331_s7 = inlined_call_operand.vmem [shape: f32[4,1], index: 7, kind: input, shape index: {}]   ;;  %s5332_s8 = inlined_call_operand.hbm [shape: f32[2,4,324], index: 8, kind: output, shape index: {}]  }
   0x1   :  { %5342 = sst [smem:[#allocation26_spill]] %s5325_s1 }
   0x2   :  { %5343 = sst [smem:[#allocation27_spill]] %s5326_s2 }
   0x3   :  { %13 = vsyncpa [#allocation3], 0 }
   0x4   :  { %15 = vsyncpa [#allocation3 + $0x1], 0 }
   0x5   :  { %16 = vsyncpa [#allocation6], 0 }
   0x6   :  { %17 = vsyncpa [#allocation9], 0 }
   0x7   :  { %18 = vsyncpa [#allocation12], 0 }
   0x8   :  { %19 = vsyncpa [#allocation4], 0 }
   0x9   :  { %21 = vsyncpa [#allocation4 + $0x1], 0  ;;  %s4575_s27 = smov 0   ;;  %s4577_s28 = smov 0  }
   0xa   :  { %s4579_s29 = smov 0   ;;  %s4581_s30 = smov 0  }
   0xb LB: > { %s4517_s9 = smov [#allocation5]   ;;  %s4596_s11 = sadd.s32 4294967295, %s4515_s30   ;;  %s4515_s30 = sphi %s4581_s30, %s5388_s30   ;;  %s4511_s29 = sphi %s4579_s29, %s5387_s29   ;;  %s4507_s28 = sphi %s4577_s28, %s5386_s28   ;;  %s4503_s27 = sphi %s4575_s27, %s5385_s27  }
   0xc   : > { %s243_s10 = sshll.u32 %s4517_s9, 4  ;;  %p3314_p0 = scmp.ge.s32.totalorder %s4515_s30, 1  ;;  %s4601_s10 = int_to_ptr.vmem [resolvable:$true] %s243_s10 }
   0xd   : > { %p5333_p1 = scmp.eq.s32.totalorder %s4596_s11, 0  ;;  %p231_p2 = scmp.lt.s32.totalorder %s4515_s30, 3 }
   0xe   : > { %s4518_s13 = smov [#allocation8]   ;;  %s4519_s16 = smov [#allocation11]  }
   0xf   : > { %p4603_p3 = pnand %p3314_p0, %p231_p2  ;;  %s269_s14 = sshll.u32 %s4518_s13, 4  ;;  %s4616_s14 = int_to_ptr.vmem [resolvable:$true] %s269_s14 }
  0x10   : > { %s295_s17 = sshll.u32 %s4519_s16, 4  ;;  %s5346_s1 = sld [smem:[#allocation26_spill]]  ;;  %s4618_s17 = int_to_ptr.vmem [resolvable:$true] %s295_s17 }
  0x11   : > { %s5344_s12 = scalar_select %p4603_p3, 1, 0 }
  0x12   : > { %p3813_p5 = pneg %p4603_p3 }
  0x14   : > { %p4612_p6 = pnand %p3813_p5, %p5333_p1 }
  0x16   : > { %s4239_s20 = scalar_lea.hbm %s5346_s1, 7872  ;;  %p4628_p8 = pneg %p4612_p6 }
  0x17   : > { %p4240_p7 = scmp.ne.s32.totalorder %s5346_s1, %s4239_s20  ;;  %p4246_p11 = scmp.lt.u32.totalorder %s4239_s20, %s5346_s1 }
  0x19   : > { %p4242_p9 = pnand %p4628_p8, %p4240_p7 }
  0x1b   : > { %p4243_p10 = pneg %p4242_p9 }
  0x1d   : > { %p4248_p12 = pnand %p4246_p11, %p4243_p10 }
  0x1f   : > { %4251 = shalt.err (!%p4248_p12)
}
  0x20   : > { %s4252_s26 = scalar_lea.vmem %s4601_s10, 7872  ;;  %p4260_p5 = scmp.lt.s32.totalorder %s4601_s10, %s4601_s10 }
  0x21   : > { %p4253_p13 = scmp.ne.s32.totalorder %s4601_s10, %s4252_s26  ;;  %p4261_p4 = scmp.lt.s32.totalorder %s4252_s26, %s4252_s26 }
  0x23   : > { %p4255_p0 = pnand %p4253_p13, %p4628_p8  ;;  %p4262_p7 = por %p4261_p4, %p4260_p5 }
  0x25   : > { %p4256_p2 = pneg %p4255_p0 }
  0x27   : > { %p4263_p9 = pnand %p4262_p7, %p4256_p2 }
  0x29   : > { %4266 = shalt.err (!%p4263_p9)
}
  0x2a   : > { %s4520_s9 = smov 192   ;;  %s4521_s13 = smov 12  }
  0x2b   : > { %3816 = dma.hbm_to_vmem [thread:$0]  (!%p4612_p6), %s5346_s1, 7872, %s4601_s10, [#allocation6], %s4520_s9, %s4520_s9, %s4521_s13  }
  0x2c   : > { %s4267_s21 = scalar_lea.hbm %s5327_s3, 7872 }
  0x2d   : > { %p4268_p4 = scmp.ne.s32.totalorder %s5327_s3, %s4267_s21  ;;  %p4274_p12 = scmp.lt.u32.totalorder %s4267_s21, %s5327_s3 }
  0x2f   : > { %p4270_p10 = pnand %p4268_p4, %p4628_p8 }
  0x31   : > { %p4271_p11 = pneg %p4270_p10 }
  0x33   : > { %p4276_p13 = pnand %p4274_p12, %p4271_p11 }
  0x35   : > { %4279 = shalt.err (!%p4276_p13)
}
  0x36   : > { %s4280_s10 = scalar_lea.vmem %s4616_s14, 7872  ;;  %p4288_p7 = scmp.lt.s32.totalorder %s4616_s14, %s4616_s14 }
  0x37   : > { %p4281_p0 = scmp.ne.s32.totalorder %s4616_s14, %s4280_s10  ;;  %p4289_p9 = scmp.lt.s32.totalorder %s4280_s10, %s4280_s10 }
  0x39   : > { %p4283_p2 = pnand %p4281_p0, %p4628_p8  ;;  %p4290_p4 = por %p4289_p9, %p4288_p7 }
  0x3b   : > { %p4284_p5 = pneg %p4283_p2 }
  0x3d   : > { %p4291_p10 = pnand %p4290_p4, %p4284_p5 }
  0x3f   : > { %4294 = shalt.err (!%p4291_p10)
}
  0x40   : > { %3822 = dma.hbm_to_vmem [thread:$0]  (!%p4612_p6), %s5327_s3, 7872, %s4616_s14, [#allocation9], %s4520_s9, %s4520_s9, %s4521_s13  }
  0x41   : > { %s4295_s21 = scalar_lea.hbm %s5329_s5, 768 }
  0x42   : > { %p4296_p11 = scmp.ne.s32.totalorder %s5329_s5, %s4295_s21  ;;  %p4302_p0 = scmp.lt.u32.totalorder %s4295_s21, %s5329_s5 }
  0x44   : > { %p4298_p12 = pnand %p4296_p11, %p4628_p8 }
  0x46   : > { %p4299_p13 = pneg %p4298_p12 }
  0x48   : > { %p4304_p2 = pnand %p4302_p0, %p4299_p13 }
  0x4a   : > { %4307 = shalt.err (!%p4304_p2)
}
  0x4b   : > { %s4308_s14 = scalar_lea.vmem %s4618_s17, 768  ;;  %p4316_p4 = scmp.lt.s32.totalorder %s4618_s17, %s4618_s17 }
  0x4c   : > { %p4309_p5 = scmp.ne.s32.totalorder %s4618_s17, %s4308_s14  ;;  %p4317_p10 = scmp.lt.s32.totalorder %s4308_s14, %s4308_s14 }
  0x4e   : > { %p4311_p7 = pnand %p4309_p5, %p4628_p8  ;;  %p4318_p11 = por %p4317_p10, %p4316_p4 }
  0x50   : > { %p4312_p9 = pneg %p4311_p7 }
  0x52   : > { %p4319_p12 = pnand %p4318_p11, %p4312_p9 }
  0x54   : > { %4322 = shalt.err (!%p4319_p12)
}
  0x55   : > { %3828 = dma.hbm_to_vmem [thread:$0]  (!%p4612_p6), %s5329_s5, 768, %s4618_s17, [#allocation12], %s4520_s9, %s4520_s9, %s4521_s13  }
  0x56   : > { %s4522_s18 = smov [#allocation7]   ;;  %s4523_s20 = smov [#allocation10]  }
  0x57   : > { %s256_s19 = sshll.u32 %s4522_s18, 4  ;;  %s282_s21 = sshll.u32 %s4523_s20, 4  ;;  %s257_s19 = int_to_ptr.vmem [resolvable:$true] %s256_s19  ;;  %s283_s21 = int_to_ptr.vmem [resolvable:$true] %s282_s21 }
  0x58   : > { %s5348_s2 = sld [smem:[#allocation27_spill]] }
  0x5e   : > { %s4323_s25 = scalar_lea.hbm %s5348_s2, 7872 }
  0x5f   : > { %p4324_p13 = scmp.ne.s32.totalorder %s5348_s2, %s4323_s25  ;;  %p4330_p5 = scmp.lt.u32.totalorder %s4323_s25, %s5348_s2 }
  0x61   : > { %p4326_p0 = pnand %p4324_p13, %p4628_p8 }
  0x63   : > { %p4327_p2 = pneg %p4326_p0 }
  0x65   : > { %p4332_p7 = pnand %p4330_p5, %p4327_p2 }
  0x67   : > { %4335 = shalt.err (!%p4332_p7)
}
  0x68   : > { %s4336_s17 = scalar_lea.vmem %s257_s19, 7872  ;;  %p4344_p11 = scmp.lt.s32.totalorder %s257_s19, %s257_s19 }
  0x69   : > { %p4337_p9 = scmp.ne.s32.totalorder %s257_s19, %s4336_s17  ;;  %p4345_p12 = scmp.lt.s32.totalorder %s4336_s17, %s4336_s17 }
  0x6b   : > { %p4339_p4 = pnand %p4337_p9, %p4628_p8  ;;  %p4346_p1 = por %p4345_p12, %p4344_p11 }
  0x6d   : > { %p4340_p10 = pneg %p4339_p4 }
  0x6f   : > { %p4347_p3 = pnand %p4346_p1, %p4340_p10 }
  0x71   : > { %4350 = shalt.err (!%p4347_p3)
}
  0x72   : > { %3819 = dma.hbm_to_vmem [thread:$0]  (!%p4612_p6), %s5348_s2, 7872, %s257_s19, [#allocation6], %s4520_s9, %s4520_s9, %s4521_s13  }
  0x73   : > { %s4351_s22 = scalar_lea.hbm %s5328_s4, 7872 }
  0x74   : > { %p4352_p1 = scmp.ne.s32.totalorder %s5328_s4, %s4351_s22  ;;  %p4358_p0 = scmp.lt.u32.totalorder %s4351_s22, %s5328_s4 }
  0x76   : > { %p4354_p3 = pnand %p4352_p1, %p4628_p8 }
  0x78   : > { %p4355_p13 = pneg %p4354_p3 }
  0x7a   : > { %p4360_p2 = pnand %p4358_p0, %p4355_p13 }
  0x7c   : > { %4363 = shalt.err (!%p4360_p2)
}
  0x7d   : > { %s4364_s10 = scalar_lea.vmem %s283_s21, 7872  ;;  %p4372_p4 = scmp.lt.s32.totalorder %s283_s21, %s283_s21 }
  0x7e   : > { %p4365_p5 = scmp.ne.s32.totalorder %s283_s21, %s4364_s10  ;;  %p4373_p10 = scmp.lt.s32.totalorder %s4364_s10, %s4364_s10 }
  0x80   : > { %p4367_p7 = pnand %p4365_p5, %p4628_p8  ;;  %p4374_p11 = por %p4373_p10, %p4372_p4 }
  0x82   : > { %p4368_p9 = pneg %p4367_p7 }
  0x84   : > { %p4375_p12 = pnand %p4374_p11, %p4368_p9 }
  0x86   : > { %4378 = shalt.err (!%p4375_p12)
}
  0x87   : > { %3825 = dma.hbm_to_vmem [thread:$0]  (!%p4612_p6), %s5328_s4, 7872, %s283_s21, [#allocation9], %s4520_s9, %s4520_s9, %s4521_s13  }
  0x88   : > { %s4524_s1 = smov [#allocation13]   ;;  %s4379_s22 = scalar_lea.hbm %s5330_s6, 768 }
  0x89   : > { %s308_s16 = sshll.u32 %s4524_s1, 4  ;;  %p4380_p1 = scmp.ne.s32.totalorder %s5330_s6, %s4379_s22  ;;  %s309_s16 = int_to_ptr.vmem [resolvable:$true] %s308_s16 }
  0x8a   : > { %p4386_p0 = scmp.lt.u32.totalorder %s4379_s22, %s5330_s6 }
  0x8b   : > { %p4382_p3 = pnand %p4380_p1, %p4628_p8 }
  0x8d   : > { %p4383_p13 = pneg %p4382_p3 }
  0x8f   : > { %p4388_p2 = pnand %p4386_p0, %p4383_p13 }
  0x91   : > { %4391 = shalt.err (!%p4388_p2)
}
  0x92   : > { %s4392_s21 = scalar_lea.vmem %s309_s16, 768  ;;  %p4400_p4 = scmp.lt.s32.totalorder %s309_s16, %s309_s16 }
  0x93   : > { %p4393_p5 = scmp.ne.s32.totalorder %s309_s16, %s4392_s21  ;;  %p4401_p10 = scmp.lt.s32.totalorder %s4392_s21, %s4392_s21 }
  0x95   : > { %p4395_p7 = pnand %p4393_p5, %p4628_p8  ;;  %p4402_p11 = por %p4401_p10, %p4400_p4 }
  0x97   : > { %p4396_p9 = pneg %p4395_p7 }
  0x99   : > { %p4403_p12 = pnand %p4402_p11, %p4396_p9 }
  0x9b   : > { %4406 = shalt.err (!%p4403_p12)
}
  0x9c   : > { %3831 = dma.hbm_to_vmem [thread:$0]  (!%p4612_p6), %s5330_s6, 768, %s309_s16, [#allocation12], %s4520_s9, %s4520_s9, %s4521_s13  }
  0x9d   : > { %s3313_s15 = sadd.s32 4294967294, %s4515_s30   ;;  %s4769_s23 = sadd.s32 1, %s4515_s30  }
  0x9e   : > { %s31_s17 = ssub.s32 %s4515_s30, %s4769_s23  ;;  %s34_s1 = sadd.s32 1, %s4511_s29 }
  0x9f   : > { %p32_p8 = scmp.eq.s32.totalorder %s31_s17, 0  ;;  %p41_p1 = scmp.ne.s32.totalorder %s4511_s29, %s4507_s28 }
  0xa0   : > { %p42_p3 = scmp.eq.s32.totalorder %s4515_s30, 0  ;;  %p47_p13 = scmp.ne.s32.totalorder %s4507_s28, %s4503_s27 }
  0xa1   : > { %s4780_s18 = scalar_select %p32_p8, %s4511_s29, %s34_s1  }
  0xa2   : > { %p43_p0 = por %p42_p3, %p41_p1  ;;  %p5349_p2 = scmp.eq.s32.totalorder %s4596_s11, 0 }
  0xa3   : > { %p218_p6 = scmp.eq.s32.totalorder %s4596_s11, 1  ;;  %p224_p7 = scmp.eq.s32.totalorder %s3313_s15, 1 }
  0xa4   : > { %p4784_p5 = por %p5349_p2, %p47_p13  ;;  %p3846_p9 = scmp.lt.s32.totalorder %s4515_s30, 2 }
  0xa5   : > { %s325_s9 = sand.u32 1, %s4511_s29   ;;  %p4791_p4 = por %p218_p6, %p41_p1 }
  0xa6   : > { %p4795_p10 = por %p224_p7, %p47_p13  ;;  %s3781_s22 = smul.u32 12, %s325_s9 }
  0xa7   : > { %s5351_s13 = scalar_select %p4791_p4, 1, 0 }
  0xa8   : > { %s5352_s16 = scalar_select %p4795_p10, 1, 0 }
  0xa9   : > { %s3782_s24 = smul.u32 192, %s4515_s30  ;;  %p4800_p11 = pnand %p3846_p9, %p43_p0 }
  0xaa   : > { %s329_s10 = scalar_lea.vmem [#allocation2], %s3781_s22  ;;  %s326_s15 = scalar_lea.sflag [#allocation3], %s325_s9 }
  0xab   : > { %s4807_s21 = scalar_lea.hbm %s5324_s0, %s3782_s24  ;;  %s337_s19 = sshll.u32 %s329_s10, 4  ;;  %s4809_s19 = int_to_ptr.vmem [resolvable:$true] %s337_s19 }
  0xac   : > { %s4407_s17 = scalar_lea.hbm %s4807_s21, 192  ;;  %p4409_p8 = pneg %p4800_p11 }
  0xad   : > { %p4408_p12 = scmp.ne.s32.totalorder %s4807_s21, %s4407_s17  ;;  %s4412_s26 = scalar_lea.hbm %s5324_s0, 384 }
  0xae   : > { %p4413_p13 = scmp.lt.u32.totalorder %s4807_s21, %s5324_s0  ;;  %p4414_p0 = scmp.lt.u32.totalorder %s4412_s26, %s4407_s17 }
  0xaf   : > { %p4410_p1 = pnand %p4409_p8, %p4408_p12  ;;  %p4416_p6 = scmp.lt.u32.totalorder %s4407_s17, %s4807_s21 }
  0xb0   : > { %p4415_p2 = por %p4414_p0, %p4413_p13 }
  0xb1   : > { %p4411_p3 = pneg %p4410_p1 }
  0xb2   : > { %p4417_p7 = por %p4416_p6, %p4415_p2 }
  0xb4   : > { %p4418_p9 = pnand %p4417_p7, %p4411_p3 }
  0xb6   : > { %4421 = shalt.err (!%p4418_p9)
}
  0xb7   : > { %s4422_s9 = scalar_lea.vmem %s4809_s19, 192  ;;  %s4525_s22 = smov [#allocation2]  }
  0xb8   : > { %p4423_p12 = scmp.ne.s32.totalorder %s4809_s19, %s4422_s9  ;;  %s4427_s10 = sshll.u32 %s4525_s22, 4  ;;  %s4428_s10 = int_to_ptr.vmem [resolvable:$false] %s4427_s10 }
  0xb9   : > { %s4429_s2 = scalar_lea.vmem %s4428_s10, 384  ;;  %p4430_p4 = scmp.lt.s32.totalorder %s4809_s19, %s4428_s10 }
  0xba   : > { %p4425_p1 = pnand %p4423_p12, %p4409_p8  ;;  %p4431_p13 = scmp.lt.s32.totalorder %s4429_s2, %s4422_s9 }
  0xbc   : > { %p4426_p10 = pneg %p4425_p1  ;;  %p4432_p0 = por %p4431_p13, %p4430_p4 }
  0xbe   : > { %p4433_p2 = pnand %p4432_p0, %p4426_p10 }
  0xc0   : > { %4436 = shalt.err (!%p4433_p2)
}
  0xc1   : > { %3835 = dma.hbm_to_vmem [thread:$0]  (!%p4800_p11), %s4807_s21, 192, %s4809_s19, %s326_s15  }
  0xc2   : > { %p5354_p3 = scmp.ne.s32.totalorder %s5344_s12, 0 }
  0xc4   : > { %346 = sbr.rel (%p5354_p3) target bundleno = 954 (0x3ba), region = 52 }
  0xcb   : > { %s4839_s17 = sand.u32 1, %s4507_s28  }
  0xcc   : > { %s3783_s1 = smul.u32 12, %s4839_s17  ;;  %s349_s24 = scalar_lea.sflag [#allocation3], %s4839_s17 }
  0xce   : > { %s4845_s26 = scalar_lea.vmem [#allocation2], %s3783_s1 }
  0xcf   : > { %4482 = dma.done.wait (%p4784_p5), %s349_s24, 192  }
  0xd0   : > { %4484 = vsyncadd (%p4784_p5), %s349_s24, 4294967104  ;;  %p5355_p4 = scmp.eq.s32.totalorder %s4596_s11, 0 }
  0xd2   : > { %4486 = dma.done.wait (%p5355_p4), [#allocation6], 15744   ;;  %p5356_p10 = pmov %p5355_p4 }
  0xd3   : > { %p5357_p11 = pmov %p5355_p4 }
  0xd4   : > { %4488 = vsyncadd (%p5356_p10), [#allocation6], 4294951552 }
  0xd5   : > { %4490 = dma.done.wait (%p5357_p11), [#allocation9], 15744   ;;  %p5358_p8 = pmov %p5355_p4 }
  0xd6   : > { %p5359_p6 = pmov %p5355_p4 }
  0xd7   : > { %4492 = vsyncadd (%p5358_p8), [#allocation9], 4294951552 }
  0xd8   : > { %4494 = dma.done.wait (%p5359_p6), [#allocation12], 1536   ;;  %p5360_p7 = pmov %p5355_p4 }
  0xd9   : > { %v5336_v0 = vmov 0   ;;  %v3898_v1 = vld [vmem:[#allocation5 + $0x4] ss:$12 sps:$4 sm:$0xff]   ;;  %v3900_v2 = vld [vmem:[#allocation5 + $0xc8] ss:$12 sps:$4 sm:$0xff]   ;;  %v5338_v41 = vmov 0.0  }
  0xda   : > { %4496 = vsyncadd (%p5360_p7), [#allocation12], 4294965760  ;;  %3897 = vset.pattern.permute.xlu0 %v5336_v0  ;;  %842 = vmatprep.subr.bf16.mxu0 %v3898_v1  ;;  %v3901_v3 = vld [vmem:[#allocation5] ss:$12 sps:$4 sm:$0xff]   ;;  %v3902_v4 = vld [vmem:[#allocation5 + $0x8] ss:$12 sps:$4 sm:$0xff]  }
  0xdb   : > { %3597 = vmatprep.subr.bf16.mxu1 %v3900_v2  ;;  %843 = vmatpush1.bf16.msra.mxu0 %v3901_v3  ;;  %v3903_v5 = vld [vmem:[#allocation5 + $0x1c] ss:$12 sps:$4 sm:$0xff]   ;;  %v3905_v6 = vld [vmem:[#allocation5 + $0xe0] ss:$12 sps:$4 sm:$0xff]   ;;  %v3906_v7 = vld [vmem:[#allocation5 + $0x18] ss:$12 sps:$4 sm:$0xff]  }
  0xdc   : > { %3598 = vmatpush3.bf16.msra.mxu1 %v3902_v4  ;;  %844 = vmatprep.subr.bf16.mxu0 %v3903_v5  ;;  %v3907_v8 = vld [vmem:[#allocation5 + $0x20] ss:$12 sps:$4 sm:$0xff]   ;;  %v3910_v10 = vld [vmem:[#allocation5 + $0xf8] ss:$12 sps:$4 sm:$0xff]   ;;  %v3911_v11 = vld [vmem:[#allocation5 + $0x30] ss:$12 sps:$4 sm:$0xff]  }
  0xdd   : > { %3599 = vmatprep.subr.bf16.mxu1 %v3905_v6  ;;  %v3908_v9 = vld [vmem:[#allocation5 + $0x34] ss:$12 sps:$4 sm:$0xff]   ;;  %v3912_v12 = vld [vmem:[#allocation5 + $0x38] ss:$12 sps:$4 sm:$0xff]   ;;  %v3915_v14 = vld [vmem:[#allocation5 + $0x110] ss:$12 sps:$4 sm:$0xff]  }
  0xde   : > { %v3913_v13 = vld [vmem:[#allocation5 + $0x4c] ss:$12 sps:$4 sm:$0xff]   ;;  %v3916_v15 = vld [vmem:[#allocation5 + $0x48] ss:$12 sps:$4 sm:$0xff]   ;;  %v3917_v16 = vld [vmem:[#allocation5 + $0x50] ss:$12 sps:$4 sm:$0xff]  }
  0xdf   : > { %845 = vmatpush1.bf16.msra.mxu0 %v3906_v7  ;;  %v3918_v17 = vld [vmem:[#allocation5 + $0x64] ss:$12 sps:$4 sm:$0xff]   ;;  %v3920_v18 = vld [vmem:[#allocation5 + $0x128] ss:$12 sps:$4 sm:$0xff]   ;;  %v3921_v19 = vld [vmem:[#allocation5 + $0x60] ss:$12 sps:$4 sm:$0xff]  }
  0xe0   : > { %3600 = vmatpush3.bf16.msra.mxu1 %v3907_v8  ;;  %846 = vmatprep.subr.bf16.mxu0 %v3908_v9  ;;  %v3922_v20 = vld [vmem:[#allocation5 + $0x68] ss:$12 sps:$4 sm:$0xff]   ;;  %v3925_v22 = vld [vmem:[#allocation5 + $0x140] ss:$12 sps:$4 sm:$0xff]   ;;  %v3926_v23 = vld [vmem:[#allocation5 + $0x78] ss:$12 sps:$4 sm:$0xff]  }
  0xe1   : > { %3601 = vmatprep.subr.bf16.mxu1 %v3910_v10  ;;  %v3923_v21 = vld [vmem:[#allocation5 + $0x7c] ss:$12 sps:$4 sm:$0xff]   ;;  %v3927_v24 = vld [vmem:[#allocation5 + $0x80] ss:$12 sps:$4 sm:$0xff]   ;;  %v3930_v26 = vld [vmem:[#allocation5 + $0x158] ss:$12 sps:$4 sm:$0xff]  }
  0xe2   : > { %v3928_v25 = vld [vmem:[#allocation5 + $0x94] ss:$12 sps:$4 sm:$0xff]   ;;  %v3931_v27 = vld [vmem:[#allocation5 + $0x90] ss:$12 sps:$4 sm:$0xff]   ;;  %v3932_v28 = vld [vmem:[#allocation5 + $0x98] ss:$12 sps:$4 sm:$0xff]  }
  0xe3   : > { %847 = vmatpush1.bf16.msra.mxu0 %v3911_v11  ;;  %v3933_v29 = vld [vmem:[#allocation5 + $0xac] ss:$12 sps:$4 sm:$0xff]   ;;  %v3935_v30 = vld [vmem:[#allocation5 + $0x170] ss:$12 sps:$4 sm:$0xff]   ;;  %v3936_v32 = vld [vmem:[#allocation5 + $0xa8] ss:$12 sps:$4 sm:$0xff]  }
  0xe4   : > { %3602 = vmatpush3.bf16.msra.mxu1 %v3912_v12  ;;  %848 = vmatprep.subr.bf16.mxu0 %v3913_v13  ;;  %v410_v31 = vld [vmem:[%s4845_s26] sm:$0xff]  ;;  %v3937_v34 = vld [vmem:[#allocation5 + $0xb0] ss:$12 sps:$4 sm:$0xff]   ;;  %vm4528_vm0 = vmmov 0   ;;  %vm832_vm1 = vcmask 1041408   ;;  %vm828_vm2 = vcmask 556032  }
  0xe5   : > { %3603 = vmatprep.subr.bf16.mxu1 %v3915_v14  ;;  %v413_v33 = vcombine.high %v410_v31, %v410_v31  ;;  %v3939_v36 = vld [vmem:[#allocation5 + $0xc4] ss:$12 sps:$4 sm:$0xff]   ;;  %v4869_v37 = vpack.c.bf16 %v410_v31, %v410_v31  ;;  %v3941_v38 = vld [vmem:[#allocation5 + $0xc0] ss:$12 sps:$4 sm:$0xff]   ;;  %v3942_v39 = vld [vmem:[#allocation5 + $0x188] ss:$12 sps:$4 sm:$0xff]  }
  0xe6   : > { %v3943_v40 = vld [vmem:[#allocation5 + $0xdc] ss:$12 sps:$4 sm:$0xff]   ;;  %v3945_v42 = vld [vmem:[#allocation5 + $0xd8] ss:$12 sps:$4 sm:$0xff]   ;;  %v3946_v43 = vld [vmem:[#allocation5 + $0x1a0] ss:$12 sps:$4 sm:$0xff]  }
  0xe7   : > { %849 = vmatpush1.bf16.msra.mxu0 %v3916_v15  ;;  %v4865_v35 = vpack.c.bf16 %v413_v33, %v413_v33  ;;  %v3947_v44 = vld [vmem:[#allocation5 + $0xf4] ss:$12 sps:$4 sm:$0xff]   ;;  %v3949_v45 = vld [vmem:[#allocation5 + $0xf0] ss:$12 sps:$4 sm:$0xff]   ;;  %v3950_v46 = vld [vmem:[#allocation5 + $0x1b8] ss:$12 sps:$4 sm:$0xff]  }
  0xe8   : > { %3604 = vmatpush3.bf16.msra.mxu1 %v3917_v16  ;;  %850 = vmatprep.subr.bf16.mxu0 %v3918_v17  ;;  %v3951_v47 = vld [vmem:[#allocation5 + $0x10c] ss:$12 sps:$4 sm:$0xff]   ;;  %v3953_v48 = vld [vmem:[#allocation5 + $0x108] ss:$12 sps:$4 sm:$0xff]   ;;  %v3954_v49 = vld [vmem:[#allocation5 + $0x1d0] ss:$12 sps:$4 sm:$0xff]  }
  0xe9   : > { %3605 = vmatprep.subr.bf16.mxu1 %v3920_v18  ;;  %956 = vmatprep.mubr.bf16.mxu1 %v4865_v35  ;;  %v3955_v50 = vld [vmem:[#allocation5 + $0x124] ss:$12 sps:$4 sm:$0xff]   ;;  %v3958_v51 = vld [vmem:[#allocation5 + $0x1e8] ss:$0 sps:$4 sm:$0x33]   ;;  %vm1673_vm6 = vcmask 1043456  }
  0xea   : > { %874 = vmatprep.mubr.bf16.mxu0 %v4865_v35  ;;  %v3957_v52 = vld [vmem:[#allocation5 + $0x120] ss:$12 sps:$4 sm:$0xff]   ;;  %v3959_v53 = vld [vmem:[#allocation5 + $0x13c] ss:$12 sps:$4 sm:$0xff]   ;;  %v840_v55 = vsel %vm832_vm1, %v3958_v51, 0  ;;  %vm1688_vm7 = vcmask 551936  }
  0xeb   : > { %851 = vmatpush1.bf16.msra.mxu0 %v3921_v19  ;;  %v411_v54 = vld [vmem:[%s4845_s26 + $0x8] sm:$0xf]  ;;  %v3961_v57 = vld [vmem:[#allocation7] ss:$12 sps:$4 sm:$0xff]   ;;  %v3965_v60 = vld [vmem:[#allocation5 + $0x154] ss:$12 sps:$4 sm:$0xff]  }
  0xec   : > { %3606 = vmatpush3.bf16.msra.mxu1 %v3922_v20  ;;  %852 = vmatprep.subr.bf16.mxu0 %v3923_v21  ;;  %v3963_v56 = vld [vmem:[#allocation7 + $0x4] ss:$12 sps:$4 sm:$0xff]   ;;  %v4881_v58 = vpack.c.bf16 %v411_v54, %v411_v54  ;;  %v3964_v59 = vld [vmem:[#allocation5 + $0x138] ss:$12 sps:$4 sm:$0xff]   ;;  %v3969_v61 = vld [vmem:[#allocation7 + $0x1c] ss:$12 sps:$4 sm:$0xff]  }
  0xed   : > { %3607 = vmatprep.subr.bf16.mxu1 %v3925_v22  ;;  %v3970_v62 = vld [vmem:[#allocation5 + $0x150] ss:$12 sps:$4 sm:$0xff]   ;;  %v3971_v1 = vld [vmem:[#allocation5 + $0x16c] ss:$12 sps:$4 sm:$0xff]   ;;  %v3976_v4 = vld [vmem:[#allocation5 + $0x168] ss:$12 sps:$4 sm:$0xff]  }
  0xee   : > { %v3967_v63 = vld [vmem:[#allocation7 + $0x18] ss:$12 sps:$4 sm:$0xff]   ;;  %v3975_v2 = vld [vmem:[#allocation7 + $0x34] ss:$12 sps:$4 sm:$0xff]   ;;  %v3973_v3 = vld [vmem:[#allocation7 + $0x30] ss:$12 sps:$4 sm:$0xff]  }
  0xef   : > { %853 = vmatpush1.bf16.msra.mxu0 %v3926_v23  ;;  %v3979_v5 = vld [vmem:[#allocation5 + $0x184] ss:$12 sps:$4 sm:$0xff]   ;;  %v3977_v7 = vld [vmem:[#allocation5 + $0x180] ss:$12 sps:$4 sm:$0xff]   ;;  %v3985_v9 = vld [vmem:[#allocation5 + $0x19c] ss:$12 sps:$4 sm:$0xff]  }
  0xf0   : > { %3608 = vmatpush3.bf16.msra.mxu1 %v3927_v24  ;;  %854 = vmatprep.subr.bf16.mxu0 %v3928_v25  ;;  %v3982_v6 = vld [vmem:[#allocation7 + $0x4c] ss:$12 sps:$4 sm:$0xff]   ;;  %v3980_v8 = vld [vmem:[#allocation7 + $0x48] ss:$12 sps:$4 sm:$0xff]   ;;  %v3988_v10 = vld [vmem:[#allocation7 + $0x64] ss:$12 sps:$4 sm:$0xff]  }
  0xf1   : > { %3609 = vmatprep.subr.bf16.mxu1 %v3930_v26  ;;  %v3983_v11 = vld [vmem:[#allocation5 + $0x198] ss:$12 sps:$4 sm:$0xff]   ;;  %v3991_v13 = vld [vmem:[#allocation5 + $0x1b4] ss:$12 sps:$4 sm:$0xff]   ;;  %v3989_v15 = vld [vmem:[#allocation5 + $0x1b0] ss:$12 sps:$4 sm:$0xff]  }
  0xf2   : > { %v3986_v12 = vld [vmem:[#allocation7 + $0x60] ss:$12 sps:$4 sm:$0xff]   ;;  %v3994_v14 = vld [vmem:[#allocation7 + $0x7c] ss:$12 sps:$4 sm:$0xff]   ;;  %v3992_v16 = vld [vmem:[#allocation7 + $0x78] ss:$12 sps:$4 sm:$0xff]  }
  0xf3   : > { %855 = vmatpush1.bf16.msra.mxu0 %v3931_v27  ;;  %v3997_v17 = vld [vmem:[#allocation5 + $0x1cc] ss:$12 sps:$4 sm:$0xff]   ;;  %v498_v18 = vld [vmem:[#allocation5 + $0x1e0] sm:$0x33]  ;;  %v3995_v20 = vld [vmem:[#allocation5 + $0x1c8] ss:$12 sps:$4 sm:$0xff]  }
  0xf4   : > { %3610 = vmatpush3.bf16.msra.mxu1 %v3932_v28  ;;  %856 = vmatprep.subr.bf16.mxu0 %v3933_v29  ;;  %v4000_v19 = vld [vmem:[#allocation7 + $0x94] ss:$12 sps:$4 sm:$0xff]   ;;  %v3390_v21 = vcombine.low %v498_v18, %v498_v18  ;;  %v3998_v22 = vld [vmem:[#allocation7 + $0x90] ss:$12 sps:$4 sm:$0xff]   ;;  %v3391_v23 = vcombine.high %v498_v18, %v498_v18  ;;  %v4004_v24 = vld [vmem:[#allocation7 + $0xac] ss:$12 sps:$4 sm:$0xff]  }
  0xf5   : > { %3611 = vmatprep.subr.bf16.mxu1 %v3935_v30  ;;  %v4002_v25 = vld [vmem:[#allocation7 + $0xa8] ss:$12 sps:$4 sm:$0xff]   ;;  %v4008_v28 = vld [vmem:[#allocation7 + $0xc4] ss:$12 sps:$4 sm:$0xff]   ;;  %v4006_v29 = vld [vmem:[#allocation7 + $0xc0] ss:$12 sps:$4 sm:$0xff]  }
  0xf6   : > { %v834_v26 = vsel %vm832_vm1, %v3390_v21, 0  ;;  %v4009_v27 = vld [vmem:[#allocation7 + $0xc8] ss:$12 sps:$4 sm:$0xff]   ;;  %v4014_v31 = vld [vmem:[#allocation7 + $0xe0] ss:$12 sps:$4 sm:$0xff]   ;;  %vm1997_vm8 = vcmask 1041409  }
  0xf7   : > { %857 = vmatpush1.bf16.msra.mxu0 %v3936_v32  ;;  %v4010_v30 = vld [vmem:[#allocation7 + $0x8] ss:$12 sps:$4 sm:$0xff]   ;;  %v4011_v33 = vld [vmem:[#allocation7 + $0xd8] ss:$12 sps:$4 sm:$0xff]   ;;  %v4035_v51 = vld [vmem:[#allocation7 + $0x80] ss:$12 sps:$4 sm:$0xff]  }
  0xf8   : > { %3612 = vmatpush3.bf16.msra.mxu1 %v3937_v34  ;;  %858 = vmatprep.subr.bf16.mxu0 %v3939_v36  ;;  %v4013_v32 = vld [vmem:[#allocation7 + $0xdc] ss:$12 sps:$4 sm:$0xff]   ;;  %v4015_v34 = vld [vmem:[#allocation7 + $0x20] ss:$12 sps:$4 sm:$0xff]   ;;  %v4019_v36 = vld [vmem:[#allocation7 + $0xf8] ss:$12 sps:$4 sm:$0xff]  }
  0xf9   : > { %3709 = vmatprep.subr.bf16.mxu1 %v5338_v41  ;;  %v4038_v54 = vld [vmem:[#allocation7 + $0x154] ss:$12 sps:$4 sm:$0xff]   ;;  %v4071_v21 = vld [vmem:[#allocation8 + $0x30] ss:$12 sps:$4 sm:$0xff]   ;;  %vm1999_vm9 = vcmask 1042434   ;;  %vm2001_vm10 = vcmask 1043459  }
  0xfa   : > { %v4070_v18 = vld [vmem:[#allocation8 + $0x1c] ss:$12 sps:$4 sm:$0xff]   ;;  %s408_s25 = scalar_lea.vmem [#allocation14], %s3783_s1  ;;  %s3784_s21 = smul.u32 192, %s4596_s11 }
  0xfb   : > { %957 = vmatmul.mubr.bf16.vlgmr.msra.gmra.mrb[0].mxu1 %v4869_v37  ;;  %859 = vmatpush1.bf16.msra.mxu0 %v3941_v38  ;;  %v4018_v38 = vld [vmem:[#allocation7 + $0xf4] ss:$12 sps:$4 sm:$0xff]   ;;  %s3186_s19 = sshll.u32 %s408_s25, 4  ;;  %s3172_s22 = scalar_lea.sflag [#allocation4], %s4839_s17  ;;  %s5282_s19 = int_to_ptr.vmem [resolvable:$true] %s3186_s19 }
  0xfc   : > { %3710 = vmatpush3.bf16.msra.mxu1 %v3942_v39  ;;  %860 = vmatprep.subr.bf16.mxu0 %v3943_v40  ;;  %v4020_v39 = vld [vmem:[#allocation7 + $0x38] ss:$12 sps:$4 sm:$0xff]   ;;  %v4016_v40 = vld [vmem:[#allocation7 + $0xf0] ss:$12 sps:$4 sm:$0xff]   ;;  %s5280_s9 = scalar_lea.hbm %s5332_s8, %s3784_s21  ;;  %s4437_s10 = scalar_lea.vmem %s5282_s19, 192 }
  0xfd   : > { %3711 = vmatprep.subr.bf16.mxu1 %v5338_v41  ;;  %3719 = vmatprep.mubr.msk.bf16.mxu1 %vm4528_vm0, %v5338_v41  ;;  %p4438_p5 = scmp.ne.s32.totalorder %s5282_s19, %s4437_s10  ;;  %p5382_p9 = scmp.ne.s32.totalorder %s5351_s13, 0 }
  0xfe   : > { %s4529_s11 = smov [#allocation14]  }
  0xff   : > { %861 = vmatpush1.bf16.msra.mxu0 %v3945_v42  ;;  %v4024_v42 = vld [vmem:[#allocation7 + $0x110] ss:$12 sps:$4 sm:$0xff]   ;;  %p4439_p12 = pnand %p4438_p5, %p5382_p9  ;;  %s4441_s2 = sshll.u32 %s4529_s11, 4  ;;  %s4442_s2 = int_to_ptr.vmem [resolvable:$false] %s4441_s2 }
 0x100   : > { %3712 = vmatpush3.bf16.msra.mxu1 %v3946_v43  ;;  %862 = vmatprep.subr.bf16.mxu0 %v3947_v44  ;;  %v4023_v43 = vld [vmem:[#allocation7 + $0x10c] ss:$12 sps:$4 sm:$0xff]   ;;  %v4021_v44 = vld [vmem:[#allocation7 + $0x108] ss:$12 sps:$4 sm:$0xff]   ;;  %s4443_s1 = scalar_lea.vmem %s4442_s2, 384  ;;  %p4444_p13 = scmp.lt.s32.totalorder %s5282_s19, %s4442_s2 }
 0x101   : > { %3713 = vmatprep.subr.bf16.mxu1 %v5338_v41  ;;  %p4440_p1 = pneg %p4439_p12  ;;  %p4445_p0 = scmp.lt.s32.totalorder %s4443_s1, %s4437_s10 }
 0x103   : > { %863 = vmatpush1.bf16.msra.mxu0 %v3949_v45  ;;  %v4025_v45 = vld [vmem:[#allocation7 + $0x50] ss:$12 sps:$4 sm:$0xff]   ;;  %p4446_p2 = por %p4445_p0, %p4444_p13 }
 0x104   : > { %3714 = vmatpush3.bf16.msra.mxu1 %v3950_v46  ;;  %864 = vmatprep.subr.bf16.mxu0 %v3951_v47  ;;  %v4028_v46 = vld [vmem:[#allocation7 + $0x124] ss:$12 sps:$4 sm:$0xff]   ;;  %v4029_v47 = vld [vmem:[#allocation7 + $0x128] ss:$12 sps:$4 sm:$0xff]  }
 0x105   : > { %3715 = vmatprep.subr.bf16.mxu1 %v5338_v41  ;;  %p4447_p3 = pnand %p4446_p2, %p4440_p1 }
 0x107   : > { %865 = vmatpush1.bf16.msra.mxu0 %v3953_v48  ;;  %v4026_v48 = vld [vmem:[#allocation7 + $0x120] ss:$12 sps:$4 sm:$0xff]  }
 0x108   : > { %3716 = vmatpush3.bf16.msra.mxu1 %v3954_v49  ;;  %866 = vmatprep.subr.bf16.mxu0 %v3955_v50  ;;  %v4034_v49 = vld [vmem:[#allocation7 + $0x140] ss:$12 sps:$4 sm:$0xff]   ;;  %v4033_v50 = vld [vmem:[#allocation7 + $0x13c] ss:$12 sps:$4 sm:$0xff]  }
 0x109   : > { %3717 = vmatprep.subr.bf16.mxu1 %v5338_v41 }
 0x10b   : > { %867 = vmatpush1.bf16.msra.mxu0 %v3957_v52  ;;  %v4031_v52 = vld [vmem:[#allocation7 + $0x138] ss:$12 sps:$4 sm:$0xff]  }
 0x10c   : > { %3718 = vmatpush3.bf16.msra.mxu1 %v840_v55  ;;  %868 = vmatprep.subr.bf16.mxu0 %v3959_v53  ;;  %v4039_v53 = vld [vmem:[#allocation7 + $0x158] ss:$12 sps:$4 sm:$0xff]  }
 0x10d   : > { %1423 = vmatprep.subr.bf16.mxu1 %v3963_v56  ;;  %v4040_v55 = vld [vmem:[#allocation7 + $0x98] ss:$12 sps:$4 sm:$0xff]   ;;  %v4036_v56 = vld [vmem:[#allocation7 + $0x150] ss:$12 sps:$4 sm:$0xff]  }
 0x10f   : > { %3720 = vmatmul.mubr.msk.bf16.vlgmr.msra.gmra.mrb[4].mxu1 %vm828_vm2, %v4881_v58  ;;  %869 = vmatpush1.bf16.msra.mxu0 %v3964_v59  ;;  %v4043_v59 = vld [vmem:[#allocation7 + $0x16c] ss:$12 sps:$4 sm:$0xff]  }
 0x110   : > { %1424 = vmatpush1.bf16.msra.mxu1 %v3961_v57  ;;  %870 = vmatprep.subr.bf16.mxu0 %v3965_v60  ;;  %v4044_v57 = vld [vmem:[#allocation7 + $0x170] ss:$12 sps:$4 sm:$0xff]  }
 0x111   : > { %1425 = vmatprep.subr.bf16.mxu1 %v3969_v61  ;;  %1455 = vmatprep.mubr.bf16.mxu1 %v4865_v35  ;;  %v4045_v60 = vld [vmem:[#allocation7 + $0xb0] ss:$12 sps:$4 sm:$0xff]   ;;  %v4041_v61 = vld [vmem:[#allocation7 + $0x168] ss:$12 sps:$4 sm:$0xff]  }
 0x113   : > { %871 = vmatpush1.bf16.msra.mxu0 %v3970_v62  ;;  %v4048_v62 = vld [vmem:[#allocation7 + $0x184] ss:$12 sps:$4 sm:$0xff]  }
 0x114   : > { %1426 = vmatpush1.bf16.msra.mxu1 %v3967_v63  ;;  %872 = vmatprep.subr.bf16.mxu0 %v3971_v1  ;;  %v4049_v63 = vld [vmem:[#allocation7 + $0x188] ss:$12 sps:$4 sm:$0xff]   ;;  %v4046_v1 = vld [vmem:[#allocation7 + $0x180] ss:$12 sps:$4 sm:$0xff]  }
 0x115   : > { %1427 = vmatprep.subr.bf16.mxu1 %v3975_v2  ;;  %v4052_v2 = vld [vmem:[#allocation7 + $0x19c] ss:$12 sps:$4 sm:$0xff]  }
 0x117   : > { %873 = vmatpush1.bf16.msra.mxu0 %v3976_v4  ;;  %v4050_v4 = vld [vmem:[#allocation7 + $0x198] ss:$12 sps:$4 sm:$0xff]  }
 0x118   : > { %1428 = vmatpush1.bf16.msra.mxu1 %v3973_v3  ;;  %883 = vmatprep.subr.bf16.mxu0 %v3979_v5  ;;  %v4053_v3 = vld [vmem:[#allocation7 + $0x1a0] ss:$12 sps:$4 sm:$0xff]  }
 0x119   : > { %1429 = vmatprep.subr.bf16.mxu1 %v3982_v6  ;;  %v4056_v5 = vld [vmem:[#allocation7 + $0x1b4] ss:$12 sps:$4 sm:$0xff]   ;;  %v4057_v6 = vld [vmem:[#allocation7 + $0x1b8] ss:$12 sps:$4 sm:$0xff]  }
 0x11a   : > { %875 = vmatmul.mubr.bf16.vlgmr.msra.gmra.mrb[0].mxu0 %v4869_v37 }
 0x11b   : > { %884 = vmatpush1.bf16.msra.mxu0 %v3977_v7  ;;  %915 = vmatprep.mubr.bf16.mxu0 %v5336_v0  ;;  %v4054_v7 = vld [vmem:[#allocation7 + $0x1b0] ss:$12 sps:$4 sm:$0xff]  }
 0x11c   : > { %1430 = vmatpush1.bf16.msra.mxu1 %v3980_v8  ;;  %885 = vmatprep.subr.bf16.mxu0 %v3985_v9  ;;  %v4060_v8 = vld [vmem:[#allocation7 + $0x1cc] ss:$12 sps:$4 sm:$0xff]   ;;  %v1084_v9 = vld [vmem:[#allocation7 + $0x1e0] sm:$0x33] }
 0x11d   : > { %1431 = vmatprep.subr.bf16.mxu1 %v3988_v10  ;;  %v4058_v10 = vld [vmem:[#allocation7 + $0x1c8] ss:$12 sps:$4 sm:$0xff]  }
 0x11f   : > { %886 = vmatpush1.bf16.msra.mxu0 %v3983_v11  ;;  %v4064_v11 = vld [vmem:[#allocation7 + $0x1e8] ss:$0 sps:$4 sm:$0x33]  }
 0x120   : > { %1432 = vmatpush1.bf16.msra.mxu1 %v3986_v12  ;;  %887 = vmatprep.subr.bf16.mxu0 %v3991_v13  ;;  %v3456_v12 = vcombine.low %v1084_v9, %v1084_v9  ;;  %v3457_v13 = vcombine.high %v1084_v9, %v1084_v9 }
 0x121   : > { %1433 = vmatprep.subr.bf16.mxu1 %v3994_v14 }
 0x122   : > { %v1415_v14 = vsel %vm832_vm1, %v3456_v12, 0 }
 0x123   : > { %888 = vmatpush1.bf16.msra.mxu0 %v3989_v15  ;;  %v1421_v15 = vsel %vm832_vm1, %v4064_v11, 0 }
 0x124   : > { %1434 = vmatpush1.bf16.msra.mxu1 %v3992_v16  ;;  %889 = vmatprep.subr.bf16.mxu0 %v3997_v17  ;;  %v4065_v16 = vld [vmem:[#allocation8] ss:$12 sps:$4 sm:$0xff]   ;;  %v4067_v17 = vld [vmem:[#allocation8 + $0x4] ss:$12 sps:$4 sm:$0xff]  }
 0x125   : > { %1435 = vmatprep.subr.bf16.mxu1 %v4000_v19  ;;  %v4068_v19 = vld [vmem:[#allocation8 + $0x18] ss:$12 sps:$4 sm:$0xff]  }
 0x127   : > { %890 = vmatpush1.bf16.msra.mxu0 %v3995_v20  ;;  %v4073_v20 = vld [vmem:[#allocation8 + $0x34] ss:$12 sps:$4 sm:$0xff]  }
 0x128   : > { %1436 = vmatpush1.bf16.msra.mxu1 %v3998_v22  ;;  %3393 = vmatprep.subr.msk.bf16.mxu0 %vm832_vm1, %v3391_v23  ;;  %v4076_v22 = vld [vmem:[#allocation8 + $0x4c] ss:$12 sps:$4 sm:$0xff]   ;;  %v4074_v23 = vld [vmem:[#allocation8 + $0x48] ss:$12 sps:$4 sm:$0xff]  }
 0x129   : > { %1437 = vmatprep.subr.bf16.mxu1 %v4004_v24  ;;  %v4079_v24 = vld [vmem:[#allocation8 + $0x64] ss:$12 sps:$4 sm:$0xff]  }
 0x12b   : > { %892 = vmatpush1.bf16.msra.mxu0 %v834_v26  ;;  %v4080_v26 = vld [vmem:[#allocation8 + $0x78] ss:$12 sps:$4 sm:$0xff]  }
 0x12c   : > { %1438 = vmatpush1.bf16.msra.mxu1 %v4002_v25  ;;  %3625 = vmatprep.subr.bf16.mxu0 %v4009_v27  ;;  %v4077_v25 = vld [vmem:[#allocation8 + $0x60] ss:$12 sps:$4 sm:$0xff]  }
 0x12d   : > { %1439 = vmatprep.subr.bf16.mxu1 %v4008_v28  ;;  %v4085_v27 = vld [vmem:[#allocation8 + $0x94] ss:$12 sps:$4 sm:$0xff]   ;;  %v4083_v28 = vld [vmem:[#allocation8 + $0x90] ss:$12 sps:$4 sm:$0xff]  }
 0x12e   : > { %3394 = vmatmul.mubr.msk.bf16.vlgmr.msra.gmra.mrb[0].mxu0 %vm828_vm2, %v4881_v58 }
 0x12f   : > { %3626 = vmatpush3.bf16.msra.mxu0 %v4010_v30  ;;  %1537 = vmatprep.mubr.bf16.mxu0 %v4865_v35  ;;  %v4030_v35 = vld [vmem:[#allocation7 + $0x68] ss:$12 sps:$4 sm:$0xff]  }
 0x130   : > { %1440 = vmatpush1.bf16.msra.mxu1 %v4006_v29  ;;  %3627 = vmatprep.subr.bf16.mxu0 %v4014_v31  ;;  %v4088_v29 = vld [vmem:[#allocation8 + $0xac] ss:$12 sps:$4 sm:$0xff]   ;;  %v4086_v30 = vld [vmem:[#allocation8 + $0xa8] ss:$12 sps:$4 sm:$0xff]  }
 0x131   : > { %1441 = vmatprep.subr.bf16.mxu1 %v4013_v32  ;;  %v4089_v31 = vld [vmem:[#allocation8 + $0xc0] ss:$12 sps:$4 sm:$0xff]   ;;  %v4091_v32 = vld [vmem:[#allocation8 + $0xc4] ss:$12 sps:$4 sm:$0xff]  }
 0x133   : > { %3628 = vmatpush3.bf16.msra.mxu0 %v4015_v34  ;;  %v4093_v34 = vld [vmem:[#allocation8 + $0x8] ss:$12 sps:$4 sm:$0xff]  }
 0x134   : > { %1442 = vmatpush1.bf16.msra.mxu1 %v4011_v33  ;;  %3629 = vmatprep.subr.bf16.mxu0 %v4019_v36  ;;  %v4092_v33 = vld [vmem:[#allocation8 + $0xc8] ss:$12 sps:$4 sm:$0xff]  }
 0x135   : > { %1443 = vmatprep.subr.bf16.mxu1 %v4018_v38  ;;  %v4104_v36 = vld [vmem:[#allocation8 + $0xdc] ss:$12 sps:$4 sm:$0xff]   ;;  %v4105_v38 = vld [vmem:[#allocation8 + $0xe0] ss:$12 sps:$4 sm:$0xff]  }
 0x137   : > { %3630 = vmatpush3.bf16.msra.mxu0 %v4020_v39  ;;  %v4102_v39 = vld [vmem:[#allocation8 + $0xd8] ss:$12 sps:$4 sm:$0xff]  }
 0x138   : > { %1444 = vmatpush1.bf16.msra.mxu1 %v4016_v40  ;;  %3631 = vmatprep.subr.bf16.mxu0 %v4024_v42  ;;  %v4106_v40 = vld [vmem:[#allocation8 + $0x20] ss:$12 sps:$4 sm:$0xff]  }
 0x139   : > { %1445 = vmatprep.subr.bf16.mxu1 %v4023_v43  ;;  %v4109_v42 = vld [vmem:[#allocation8 + $0xf4] ss:$12 sps:$4 sm:$0xff]   ;;  %v4110_v43 = vld [vmem:[#allocation8 + $0xf8] ss:$12 sps:$4 sm:$0xff]  }
 0x13b   : > { %3632 = vmatpush3.bf16.msra.mxu0 %v4025_v45  ;;  %v4111_v45 = vld [vmem:[#allocation8 + $0x38] ss:$12 sps:$4 sm:$0xff]  }
 0x13c   : > { %1446 = vmatpush1.bf16.msra.mxu1 %v4021_v44  ;;  %3633 = vmatprep.subr.bf16.mxu0 %v4029_v47  ;;  %v4107_v44 = vld [vmem:[#allocation8 + $0xf0] ss:$12 sps:$4 sm:$0xff]   ;;  %v4112_v47 = vld [vmem:[#allocation8 + $0x108] ss:$12 sps:$4 sm:$0xff]  }
 0x13d   : > { %1447 = vmatprep.subr.bf16.mxu1 %v4028_v46 }
 0x13f   : > { %3634 = vmatpush3.bf16.msra.mxu0 %v4030_v35  ;;  %v4114_v35 = vld [vmem:[#allocation8 + $0x10c] ss:$12 sps:$4 sm:$0xff]  }
 0x140   : > { %1448 = vmatpush1.bf16.msra.mxu1 %v4026_v48  ;;  %3635 = vmatprep.subr.bf16.mxu0 %v4034_v49  ;;  %v4115_v49 = vld [vmem:[#allocation8 + $0x110] ss:$12 sps:$4 sm:$0xff]  }
 0x141   : > { %1449 = vmatprep.subr.bf16.mxu1 %v4033_v50  ;;  %v4116_v50 = vld [vmem:[#allocation8 + $0x50] ss:$12 sps:$4 sm:$0xff]  }
 0x143   : > { %3636 = vmatpush3.bf16.msra.mxu0 %v4035_v51 }
 0x144   : > { %1450 = vmatpush1.bf16.msra.mxu1 %v4031_v52  ;;  %3637 = vmatprep.subr.bf16.mxu0 %v4039_v53  ;;  %v4119_v53 = vld [vmem:[#allocation8 + $0x124] ss:$12 sps:$4 sm:$0xff]  }
 0x145   : > { %1451 = vmatprep.subr.bf16.mxu1 %v4038_v54 }
 0x147   : > { %3638 = vmatpush3.bf16.msra.mxu0 %v4040_v55  ;;  %v4120_v55 = vld [vmem:[#allocation8 + $0x128] ss:$12 sps:$4 sm:$0xff]  }
 0x148   : > { %1452 = vmatpush1.bf16.msra.mxu1 %v4036_v56  ;;  %3639 = vmatprep.subr.bf16.mxu0 %v4044_v57  ;;  %v4117_v56 = vld [vmem:[#allocation8 + $0x120] ss:$12 sps:$4 sm:$0xff]   ;;  %v4121_v57 = vld [vmem:[#allocation8 + $0x68] ss:$12 sps:$4 sm:$0xff]  }
 0x149   : > { %1453 = vmatprep.subr.bf16.mxu1 %v4043_v59  ;;  %v4124_v59 = vld [vmem:[#allocation8 + $0x13c] ss:$12 sps:$4 sm:$0xff]  }
 0x14b   : > { %3640 = vmatpush3.bf16.msra.mxu0 %v4045_v60  ;;  %v4125_v60 = vld [vmem:[#allocation8 + $0x140] ss:$12 sps:$4 sm:$0xff]  }
 0x14c   : > { %1454 = vmatpush1.bf16.msra.mxu1 %v4041_v61  ;;  %3723 = vmatprep.subr.bf16.mxu0 %v5338_v41  ;;  %v4122_v61 = vld [vmem:[#allocation8 + $0x138] ss:$12 sps:$4 sm:$0xff]  }
 0x14d   : > { %1464 = vmatprep.subr.bf16.mxu1 %v4048_v62  ;;  %v4126_v62 = vld [vmem:[#allocation8 + $0x80] ss:$12 sps:$4 sm:$0xff]  }
 0x14e   : > { %1538 = vmatmul.mubr.bf16.vlgmr.msra.gmra.mrb[4].mxu0 %v4869_v37 }
 0x14f   : > { %1456 = vmatmul.mubr.bf16.vlgmr.msra.gmra.mrb[8].mxu1 %v4869_v37  ;;  %3724 = vmatpush3.bf16.msra.mxu0 %v4049_v63  ;;  %v4061_v37 = vld [vmem:[#allocation7 + $0x1d0] ss:$12 sps:$4 sm:$0xff]   ;;  %v4129_v63 = vld [vmem:[#allocation8 + $0x154] ss:$12 sps:$4 sm:$0xff]  }
 0x150   : > { %1465 = vmatpush1.bf16.msra.mxu1 %v4046_v1  ;;  %3725 = vmatprep.subr.bf16.mxu0 %v5338_v41  ;;  %v4130_v1 = vld [vmem:[#allocation8 + $0x158] ss:$12 sps:$4 sm:$0xff]  }
 0x151   : > { %1466 = vmatprep.subr.bf16.mxu1 %v4052_v2  ;;  %1496 = vmatprep.mubr.bf16.mxu1 %v5336_v0  ;;  %v4127_v2 = vld [vmem:[#allocation8 + $0x150] ss:$12 sps:$4 sm:$0xff]  }
 0x152   : > { %3733 = vmatprep.mubr.msk.bf16.mxu0 %vm4528_vm0, %v5338_v41 }
 0x153   : > { %3726 = vmatpush3.bf16.msra.mxu0 %v4053_v3  ;;  %v4131_v3 = vld [vmem:[#allocation8 + $0x98] ss:$12 sps:$4 sm:$0xff]  }
 0x154   : > { %1467 = vmatpush1.bf16.msra.mxu1 %v4050_v4  ;;  %3727 = vmatprep.subr.bf16.mxu0 %v5338_v41  ;;  %v4134_v4 = vld [vmem:[#allocation8 + $0x16c] ss:$12 sps:$4 sm:$0xff]  }
 0x155   : > { %1468 = vmatprep.subr.bf16.mxu1 %v4056_v5  ;;  %v4135_v5 = vld [vmem:[#allocation8 + $0x170] ss:$12 sps:$4 sm:$0xff]  }
 0x157   : > { %3728 = vmatpush3.bf16.msra.mxu0 %v4057_v6  ;;  %v4132_v6 = vld [vmem:[#allocation8 + $0x168] ss:$12 sps:$4 sm:$0xff]  }
 0x158   : > { %1469 = vmatpush1.bf16.msra.mxu1 %v4054_v7  ;;  %3729 = vmatprep.subr.bf16.mxu0 %v5338_v41  ;;  %v4136_v7 = vld [vmem:[#allocation8 + $0xb0] ss:$12 sps:$4 sm:$0xff]  }
 0x159   : > { %1470 = vmatprep.subr.bf16.mxu1 %v4060_v8 }
 0x15b   : > { %3730 = vmatpush3.bf16.msra.mxu0 %v4061_v37 }
 0x15c   : > { %1471 = vmatpush1.bf16.msra.mxu1 %v4058_v10  ;;  %3731 = vmatprep.subr.bf16.mxu0 %v5338_v41  ;;  %v4139_v10 = vld [vmem:[#allocation8 + $0x184] ss:$12 sps:$4 sm:$0xff]  }
 0x15d   : > { %3459 = vmatprep.subr.msk.bf16.mxu1 %vm832_vm1, %v3457_v13 }
 0x15f   : > { %3732 = vmatpush3.bf16.msra.mxu0 %v1421_v15 }
 0x160   : > { %1473 = vmatpush1.bf16.msra.mxu1 %v1415_v14  ;;  %2354 = vmatprep.subr.bf16.mxu0 %v4067_v17 }
 0x161   : > { %3653 = vmatprep.subr.bf16.mxu1 %v4092_v33  ;;  %v1607_v33 = vld [vmem:[#allocation13 + $0xc] sm:$0xff] }
 0x162   : > { %3734 = vmatmul.mubr.msk.bf16.vlgmr.msra.gmra.mrb[8].mxu0 %vm828_vm2, %v4881_v58 }
 0x163   : > { %3460 = vmatmul.mubr.msk.bf16.vlgmr.msra.gmra.mrb[8].mxu1 %vm828_vm2, %v4881_v58  ;;  %2355 = vmatpush1.bf16.msra.mxu0 %v4065_v16  ;;  %v4082_v58 = vld [vmem:[#allocation8 + $0x7c] ss:$12 sps:$4 sm:$0xff]  }
 0x164   : > { %2356 = vmatprep.subr.bf16.mxu0 %v4070_v18  ;;  %3654 = vmatpush3.bf16.msra.mxu1 %v4093_v34  ;;  %v1609_v34 = vld [vmem:[#allocation13 + $0x18] sm:$0xff] }
 0x165   : > { %3655 = vmatprep.subr.bf16.mxu1 %v4105_v38 }
 0x167   : > { %2357 = vmatpush1.bf16.msra.mxu0 %v4068_v19 }
 0x168   : > { %2358 = vmatprep.subr.bf16.mxu0 %v4073_v20  ;;  %3656 = vmatpush3.bf16.msra.mxu1 %v4106_v40 }
 0x169   : > { %3657 = vmatprep.subr.bf16.mxu1 %v4110_v43 }
 0x16b   : > { %2359 = vmatpush1.bf16.msra.mxu0 %v4071_v21 }
 0x16c   : > { %2360 = vmatprep.subr.bf16.mxu0 %v4076_v22  ;;  %3658 = vmatpush3.bf16.msra.mxu1 %v4111_v45  ;;  %v4947_v45 = vld [vmem:[#allocation13 + $0x14] sm:$0xf] }
 0x16d   : > { %3659 = vmatprep.subr.bf16.mxu1 %v4115_v49 }
 0x16f   : > { %2361 = vmatpush1.bf16.msra.mxu0 %v4074_v23 }
 0x170   : > { %2362 = vmatprep.subr.bf16.mxu0 %v4079_v24  ;;  %3660 = vmatpush3.bf16.msra.mxu1 %v4116_v50  ;;  %v4965_v50 = vld [vmem:[#allocation13 + $0x2c] sm:$0xf] }
 0x171   : > { %3661 = vmatprep.subr.bf16.mxu1 %v4120_v55  ;;  %v4155_v55 = vld [vmem:[#allocation8 + $0x1e8] ss:$0 sps:$4 sm:$0x33]  }
 0x173   : > { %2363 = vmatpush1.bf16.msra.mxu0 %v4077_v25  ;;  %v4917_v25 = vld [vmem:[#allocation11] sm:$0xff] }
 0x174   : > { %2364 = vmatprep.subr.bf16.mxu0 %v4082_v58  ;;  %3662 = vmatpush3.bf16.msra.mxu1 %v4121_v57  ;;  %v4919_v58 = vld [vmem:[#allocation11 + $0xc] sm:$0xff]  ;;  %v4943_v43 = vcombine.high %v4917_v25, %v4917_v25 }
 0x175   : > { %3663 = vmatprep.subr.bf16.mxu1 %v4125_v60 }
 0x177   : > { %2365 = vmatpush1.bf16.msra.mxu0 %v4080_v26  ;;  %v4921_v26 = vld [vmem:[#allocation11 + $0x8] sm:$0xf] }
 0x178   : > { %2366 = vmatprep.subr.bf16.mxu0 %v4085_v27  ;;  %3664 = vmatpush3.bf16.msra.mxu1 %v4126_v62  ;;  %v4923_v27 = vld [vmem:[#allocation11 + $0x14] sm:$0xf] }
 0x179   : > { %3665 = vmatprep.subr.bf16.mxu1 %v4130_v1 }
 0x17b   : > { %2367 = vmatpush1.bf16.msra.mxu0 %v4083_v28 }
 0x17c   : > { %2368 = vmatprep.subr.bf16.mxu0 %v4088_v29  ;;  %3666 = vmatpush3.bf16.msra.mxu1 %v4131_v3  ;;  %v4925_v29 = vld [vmem:[#allocation11 + $0x18] sm:$0xff] }
 0x17d   : > { %3667 = vmatprep.subr.bf16.mxu1 %v4135_v5 }
 0x17f   : > { %2369 = vmatpush1.bf16.msra.mxu0 %v4086_v30  ;;  %v4927_v30 = vld [vmem:[#allocation11 + $0x24] sm:$0xff] }
 0x180   : > { %2370 = vmatprep.subr.bf16.mxu0 %v4091_v32  ;;  %3668 = vmatpush3.bf16.msra.mxu1 %v4136_v7  ;;  %v4929_v32 = vld [vmem:[#allocation11 + $0x20] sm:$0xf] }
 0x181   : > { %3737 = vmatprep.subr.bf16.mxu1 %v5338_v41 }
 0x183   : > { %2371 = vmatpush1.bf16.msra.mxu0 %v4089_v31  ;;  %v1605_v31 = vld [vmem:[#allocation13] sm:$0xff] }
 0x184   : > { %2372 = vmatprep.subr.bf16.mxu0 %v4104_v36  ;;  %v4931_v36 = vld [vmem:[#allocation8 + $0x1e0] sm:$0x33]  ;;  %v4963_v49 = vcombine.high %v1605_v31, %v1605_v31 }
 0x185   : > { %5363 = vst [vmem:[#allocation20_spill] sm:$0xff] %v4931_v36 }
 0x187   : > { %2373 = vmatpush1.bf16.msra.mxu0 %v4102_v39  ;;  %v4935_v39 = vld [vmem:[#allocation11 + $0x2c] sm:$0xf] }
 0x188   : > { %2374 = vmatprep.subr.bf16.mxu0 %v4109_v42  ;;  %v1611_v42 = vld [vmem:[#allocation13 + $0x24] sm:$0xff] }
 0x189   : > { %v4985_v60 = vcombine.high %v1611_v42, %v1611_v42 }
 0x18b   : > { %2375 = vmatpush1.bf16.msra.mxu0 %v4107_v44  ;;  %v4945_v44 = vld [vmem:[#allocation13 + $0x8] sm:$0xf] }
 0x18c   : > { %2376 = vmatprep.subr.bf16.mxu0 %v4114_v35  ;;  %v4957_v35 = vcombine.high %v4925_v29, %v4925_v29 }
 0x18f   : > { %2377 = vmatpush1.bf16.msra.mxu0 %v4112_v47  ;;  %v4953_v47 = vcombine.high %v4919_v58, %v4919_v58 }
 0x190   : > { %2378 = vmatprep.subr.bf16.mxu0 %v4119_v53  ;;  %v4973_v53 = vcombine.high %v1609_v34, %v1609_v34 }
 0x193   : > { %2379 = vmatpush1.bf16.msra.mxu0 %v4117_v56 }
 0x194   : > { %2380 = vmatprep.subr.bf16.mxu0 %v4124_v59 }
 0x197   : > { %2381 = vmatpush1.bf16.msra.mxu0 %v4122_v61 }
 0x198   : > { %2382 = vmatprep.subr.bf16.mxu0 %v4129_v63 }
 0x19b   : > { %2383 = vmatpush1.bf16.msra.mxu0 %v4127_v2 }
 0x19c   : > { %2384 = vmatprep.subr.bf16.mxu0 %v4134_v4 }
 0x19f   : > { %2385 = vmatpush1.bf16.msra.mxu0 %v4132_v6 }
 0x1a0   : > { %2395 = vmatprep.subr.bf16.mxu0 %v4139_v10 }
 0x1ce   : > { %v3613_v46 = vpop.f32.mrb[0].mxu1 }
 0x1cf   : > { %v3614_v48 = vpop.f32.mrb[1].mxu1 }
 0x1d0   : > { %v3615_v51 = vadd.f32 %v3614_v48, %v3613_v46  ;;  %v3616_v52 = vpop.f32.mrb[2].mxu1  ;;  %v4949_v46 = vld [vmem:[#allocation13 + $0x20] sm:$0xf]  ;;  %v4961_v48 = vcombine.high %v4927_v30, %v4927_v30 }
 0x1d1   : > { %v3617_v54 = vpop.f32.mrb[3].mxu1  ;;  %v4971_v52 = vcombine.high %v1607_v33, %v1607_v33 }
 0x1d2   : > { %v3522_v54 = vcombine.low %v4931_v36, %v4931_v36 }
 0x1e2   : > { %v998_v8 = vpop.f32.mrb[4].mxu1 }
 0x1e3   : > { %v999_v9 = vadd.f32 %v3615_v51, %v998_v8  ;;  %v3721_v37 = vpop.f32.mrb[5].mxu1  ;;  %v5012_v8 = vsel %vm832_vm1, %v3522_v54, 0 }
 0x1e4   : > { %v1001_v11 = vpop.f32.mrb[6].mxu1  ;;  %5368 = vst [vmem:[#allocation21_spill] sm:$0xff] %v5012_v8 }
 0x1e5   : > { %v3722_v12 = vpop.f32.mrb[7].mxu1  ;;  %v1587_v22 = vand.u32 2147483647, %v999_v9 }
 0x1e7   : > { %vm4913_vm3 = vcmp.ge.f32.partialorder %v1587_v22, 0.5 }
 0x1e8   : > { %v1593_v38 = vsel %vm4913_vm3, %v999_v9, 0.0  ;;  %v5015_v9 = vsel %vm832_vm1, %v4155_v55, 0 }
 0x1e9   : > { %v4978_v56 = vmul.f32 %v4921_v26, %v1593_v38  ;;  %v4981_v57 = vmul.f32 %v4923_v27, %v1593_v38  ;;  %v4988_v61 = vmul.f32 %v4929_v32, %v1593_v38  ;;  %v4991_v62 = vmul.f32 %v4935_v39, %v1593_v38  ;;  %5369 = vst [vmem:[#allocation22_spill] sm:$0xff] %v5015_v9 }
 0x1ea   : > { %v4994_v63 = vmul.f32 %v4945_v44, %v1593_v38  ;;  %v4997_v1 = vmul.f32 %v4947_v45, %v1593_v38  ;;  %v5000_v2 = vmul.f32 %v4949_v46, %v1593_v38  ;;  %v5003_v3 = vmul.f32 %v4965_v50, %v1593_v38 }
 0x201   : > { %v917_v13 = vpop.f32.mrb[0].mxu0 }
 0x202   : > { %v919_v14 = vpop.f32.mrb[1].mxu0  ;;  %v1585_v23 = vand.u32 2147483647, %v917_v13 }
 0x203   : > { %v921_v15 = vpop.f32.mrb[2].mxu0  ;;  %v1586_v28 = vand.u32 2147483647, %v919_v14 }
 0x204   : > { %v922_v16 = vpop.f32.mrb[3].mxu0  ;;  %vm4937_vm4 = vcmp.ge.f32.partialorder %v1585_v23, 0.5 }
 0x205   : > { %vm4967_vm5 = vcmp.ge.f32.partialorder %v1586_v28, 0.5  ;;  %v1591_v59 = vsel %vm4937_vm4, %v917_v13, 0.0 }
 0x206   : > { %v1592_v4 = vsel %vm4967_vm5, %v919_v14, 0.0  ;;  %v1625_v6 = vmul.f32 %v4917_v25, %v1591_v59  ;;  %v1628_v7 = vmul.f32 %v4919_v58, %v1591_v59  ;;  %v5018_v37 = vmul.f32 %v4925_v29, %v1591_v59 }
 0x207   : > { %v5021_v10 = vmul.f32 %v4927_v30, %v1591_v59  ;;  %v1759_v11 = vmul.f32 %v1605_v31, %v1591_v59  ;;  %v1762_v12 = vmul.f32 %v1607_v33, %v1591_v59  ;;  %v1765_v13 = vmul.f32 %v1609_v34, %v1591_v59 }
 0x208   : > { %v1768_v14 = vmul.f32 %v1611_v42, %v1591_v59  ;;  %v5024_v16 = vmul.f32 %v4943_v43, %v1592_v4  ;;  %v5034_v22 = vmul.f32 %v4961_v48, %v1592_v4  ;;  %v5037_v23 = vmul.f32 %v4963_v49, %v1592_v4 }
 0x209   : > { %v5042_v55 = vmul.f32 %v4971_v52, %v1592_v4  ;;  %v5048_v59 = vmul.f32 %v4985_v60, %v1592_v4 }
 0x20b   : > { %5370 = vst [vmem:[#allocation23_spill] sm:$0xff] %v5042_v55  ;;  %5372 = vst [vmem:[#allocation25_spill] sm:$0xff] %v5048_v59 }
 0x221   : > { %v3641_v17 = vpop.f32.mrb[4].mxu0 }
 0x222   : > { %v3642_v18 = vpop.f32.mrb[5].mxu0 }
 0x223   : > { %v4911_v19 = vadd.f32 %v3642_v18, %v3641_v17  ;;  %v3644_v20 = vpop.f32.mrb[6].mxu0  ;;  %v5027_v17 = vmul.f32 %v4953_v47, %v1592_v4 }
 0x224   : > { %v3645_v21 = vpop.f32.mrb[7].mxu0 }
 0x225   : > { %v5031_v21 = vmul.f32 %v4957_v35, %v1592_v4 }
 0x235   : > { %v1579_v15 = vpop.f32.mrb[8].mxu0 }
 0x236   : > { %v1498_v18 = vpop.f32.mrb[8].mxu1  ;;  %v1580_v20 = vadd.f32 %v4911_v19, %v1579_v15  ;;  %v3735_v28 = vpop.f32.mrb[9].mxu0  ;;  %v5045_v19 = vmul.f32 %v4973_v53, %v1592_v4 }
 0x237   : > { %v1594_v38 = vsel %vm4937_vm4, %v1498_v18, 0.0  ;;  %v1500_v54 = vpop.f32.mrb[9].mxu1  ;;  %v1582_v15 = vpop.f32.mrb[10].mxu0 }
 0x238   : > { %5371 = vst [vmem:[#allocation24_spill] sm:$0xff] %v5045_v19  ;;  %v1649_v5 = vmul.f32 %v1605_v31, %v1594_v38  ;;  %v1652_v0 = vmul.f32 %v1607_v33, %v1594_v38  ;;  %v5050_v41 = vmul.f32 %v1609_v34, %v1594_v38  ;;  %v5052_v28 = vmul.f32 %v1611_v42, %v1594_v38  ;;  %v1502_v40 = vpop.f32.mrb[10].mxu1  ;;  %v3736_v18 = vpop.f32.mrb[11].mxu0 }
 0x239   : > { %v1771_v9 = vmul.f32 %v4917_v25, %v1594_v38  ;;  %v1774_v8 = vmul.f32 %v4919_v58, %v1594_v38  ;;  %v1777_v36 = vmul.f32 %v4925_v29, %v1594_v38  ;;  %v1780_v19 = vmul.f32 %v4927_v30, %v1594_v38  ;;  %v1503_v55 = vpop.f32.mrb[11].mxu1 }
 0x23a   : > { %v1661_v4 = vsub.f32 %v1625_v6, %v1649_v5  ;;  %v1664_v59 = vsub.f32 %v1628_v7, %v1652_v0  ;;  %v1667_v31 = vsub.f32 %v5018_v37, %v5050_v41  ;;  %v1670_v33 = vsub.f32 %v5021_v10, %v5052_v28 }
 0x23b   : > { %v1783_v34 = vadd.f32 %v1771_v9, %v1759_v11  ;;  %v1786_v42 = vadd.f32 %v1774_v8, %v1762_v12  ;;  %v5062_v15 = vadd.f32 %v1777_v36, %v1765_v13  ;;  %v5064_v25 = vadd.f32 %v1780_v19, %v1768_v14 }
 0x23c   : > { %v1674_v58 = vsel %vm1673_vm6, %v1661_v4, 0.0  ;;  %v1696_v29 = vsel %vm1673_vm6, %v1664_v59, 0.0  ;;  %v1596_v30 = vsel %vm4913_vm3, %v1580_v20, 0.0  ;;  %v5072_v0 = vsel %vm4967_vm5, %v1500_v54, 0.0 }
 0x23d   : > { %v1675_v5 = vrot.slane %v1674_v58, 4  ;;  %v1697_v6 = vrot.slane %v1696_v29, 4  ;;  %v1795_v7 = vsel %vm1673_vm6, %v1783_v34, 0.0  ;;  %v1816_v36 = vsel %vm1673_vm6, %v1786_v42, 0.0 }
 0x23e   : > { %v1796_v8 = vrot.slane %v1795_v7, 4  ;;  %v1817_v9 = vrot.slane %v1816_v36, 4  ;;  %v1651_v11 = vmul.f32 %v4945_v44, %v1596_v30  ;;  %v1654_v12 = vmul.f32 %v4947_v45, %v1596_v30 }
 0x23f   : > { %v5078_v13 = vadd.f32 %v1675_v5, %v1674_v58  ;;  %v5080_v24 = vadd.f32 %v1697_v6, %v1696_v29  ;;  %v1657_v51 = vmul.f32 %v4949_v46, %v1596_v30  ;;  %v1660_v14 = vmul.f32 %v4965_v50, %v1596_v30 }
 0x240   : > { %v5084_v20 = vadd.f32 %v1796_v8, %v1795_v7  ;;  %v5086_v38 = vadd.f32 %v1817_v9, %v1816_v36  ;;  %v1663_v54 = vsub.f32 %v4978_v56, %v1651_v11  ;;  %v1666_v55 = vsub.f32 %v4981_v57, %v1654_v12 }
 0x241   : > { %v1669_v44 = vsub.f32 %v4988_v61, %v1657_v51  ;;  %v1672_v45 = vsub.f32 %v4991_v62, %v1660_v14  ;;  %v1773_v19 = vmul.f32 %v4921_v26, %v1596_v30  ;;  %v1776_v59 = vmul.f32 %v4923_v27, %v1596_v30 }
 0x242   : > { %v1689_v46 = vsel %vm1688_vm7, %v1663_v54, 0.0  ;;  %v1710_v50 = vsel %vm1688_vm7, %v1666_v55, 0.0  ;;  %v1779_v40 = vmul.f32 %v4929_v32, %v1596_v30  ;;  %v1782_v18 = vmul.f32 %v4935_v39, %v1596_v30 }
 0x243   : > { %v1690_v4 = vrot.slane %v1689_v46, 4  ;;  %v1711_v56 = vrot.slane %v1710_v50, 4  ;;  %v1731_v57 = vsel %vm1688_vm7, %v1669_v44, 0.0  ;;  %v5100_v61 = vsel %vm1688_vm7, %v1672_v45, 0.0 }
 0x244   : > { %v1732_v62 = vrot.slane %v1731_v57, 4  ;;  %v1753_v26 = vrot.slane %v5100_v61, 4  ;;  %v1785_v27 = vadd.f32 %v1773_v19, %v4994_v63  ;;  %v1788_v34 = vadd.f32 %v1776_v59, %v4997_v1 }
 0x245   : > { %v5105_v42 = vadd.f32 %v1690_v4, %v1689_v46  ;;  %v5107_v58 = vadd.f32 %v1711_v56, %v1710_v50  ;;  %v1791_v32 = vadd.f32 %v1779_v40, %v5000_v2  ;;  %v1794_v39 = vadd.f32 %v1782_v18, %v5003_v3  ;;  %v5373_v40 = vld [vmem:[#allocation23_spill] sm:$0xff]  ;;  %v5374_v18 = vld [vmem:[#allocation24_spill] sm:$0xff] }
 0x246   : > { %v5111_v29 = vadd.f32 %v1732_v62, %v1731_v57  ;;  %v1809_v30 = vsel %vm1688_vm7, %v1785_v27, 0.0  ;;  %v1830_v5 = vsel %vm1688_vm7, %v1788_v34, 0.0  ;;  %v1650_v6 = vmul.f32 %v4963_v49, %v5072_v0  ;;  %v3156_v57 = vld [vmem:[%s5331_s7] sm:$0xf] }
 0x247   : > { %v1692_v63 = vrot.slane %v5105_v42, 2  ;;  %v1713_v1 = vrot.slane %v5107_v58, 2  ;;  %v1810_v7 = vrot.slane %v1809_v30, 4  ;;  %v1831_v36 = vrot.slane %v1830_v5, 4  ;;  %3159 = vperm.xlu0 %3897, %v3156_v57  }
 0x248   : > { %v1851_v8 = vsel %vm1688_vm7, %v1791_v32, 0.0  ;;  %v5121_v2 = vsel %vm1688_vm7, %v1794_v39, 0.0  ;;  %v1653_v3 = vmul.f32 %v4971_v52, %v5072_v0  ;;  %v1656_v9 = vmul.f32 %v4973_v53, %v5072_v0 }
 0x249   : > { %v5127_v11 = vadd.f32 %v1810_v7, %v1809_v30  ;;  %v5129_v49 = vadd.f32 %v1831_v36, %v1830_v5  ;;  %v1852_v12 = vrot.slane %v1851_v8, 4  ;;  %v1873_v51 = vrot.slane %v5121_v2, 4 }
 0x24a   : > { %v1659_v14 = vmul.f32 %v4985_v60, %v5072_v0  ;;  %v1662_v54 = vsub.f32 %v5024_v16, %v1650_v6  ;;  %v1665_v55 = vsub.f32 %v5027_v17, %v1653_v3  ;;  %v1668_v44 = vsub.f32 %v5031_v21, %v1656_v9 }
 0x24b   : > { %v1812_v52 = vrot.slane %v5127_v11, 2  ;;  %v1833_v53 = vrot.slane %v5129_v49, 2  ;;  %v5139_v45 = vadd.f32 %v1852_v12, %v1851_v8  ;;  %v1772_v19 = vmul.f32 %v4943_v43, %v5072_v0 }
 0x24c   : > { %v1775_v59 = vmul.f32 %v4953_v47, %v5072_v0  ;;  %v1778_v60 = vmul.f32 %v4957_v35, %v5072_v0  ;;  %v5149_v16 = vmul.f32 %v4961_v48, %v5072_v0  ;;  %v1671_v17 = vsub.f32 %v5034_v22, %v1659_v14 }
 0x24d   : > { %v5153_v21 = vadd.f32 %v1772_v19, %v5037_v23  ;;  %v1681_v46 = vsel %vm1673_vm6, %v1662_v54, 0.0  ;;  %v1703_v50 = vsel %vm1673_vm6, %v1665_v55, 0.0  ;;  %v1724_v43 = vsel %vm1673_vm6, %v1668_v44, 0.0 }
 0x24e   : > { %v5159_v47 = vadd.f32 %v1775_v59, %v5373_v40  ;;  %v5162_v35 = vadd.f32 %v1778_v60, %v5374_v18  ;;  %v1682_v4 = vrot.slane %v1681_v46, 4  ;;  %v1704_v48 = vrot.slane %v1703_v50, 4 }
 0x24f   : > { %v1725_v0 = vrot.slane %v1724_v43, 4  ;;  %v1745_v22 = vsel %vm1673_vm6, %v1671_v17, 0.0  ;;  %v1677_v23 = vrot.slane %v5078_v13, 2  ;;  %v1699_v56 = vrot.slane %v5080_v24, 2 }
 0x250   : > { %v1683_v62 = vadd.f32 %v1682_v4, %v1681_v46  ;;  %v1705_v27 = vadd.f32 %v1704_v48, %v1703_v50  ;;  %v1746_v34 = vrot.slane %v1745_v22, 4  ;;  %v1717_v32 = vsel %vm1673_vm6, %v1667_v31, 0.0 }
 0x251   : > { %v1726_v39 = vadd.f32 %v1725_v0, %v1724_v43  ;;  %v1678_v30 = vadd.f32 %v1677_v23, %v5078_v13  ;;  %v1700_v5 = vadd.f32 %v1699_v56, %v5080_v24  ;;  %v1718_v6 = vrot.slane %v1717_v32, 4 }
 0x252   : > { %v1684_v7 = vrot.slane %v1683_v62, 2  ;;  %v1706_v36 = vrot.slane %v1705_v27, 2  ;;  %v1747_v8 = vadd.f32 %v1746_v34, %v1745_v22  ;;  %v1738_v3 = vsel %vm1673_vm6, %v1670_v33, 0.0 }
 0x253   : > { %v1727_v9 = vrot.slane %v1726_v39, 2  ;;  %v1679_v12 = vrot.slane %v1678_v30, 1  ;;  %v1701_v41 = vrot.slane %v1700_v5, 1  ;;  %v1719_v37 = vadd.f32 %v1718_v6, %v1717_v32 }
 0x254   : > { %v1685_v31 = vadd.f32 %v1684_v7, %v1683_v62  ;;  %v1707_v14 = vadd.f32 %v1706_v36, %v1705_v27  ;;  %v1748_v54 = vrot.slane %v1747_v8, 2  ;;  %v1739_v13 = vrot.slane %v1738_v3, 4 }
 0x255   : > { %v1728_v55 = vadd.f32 %v1727_v9, %v1726_v39  ;;  %v1680_v24 = vadd.f32 %v1679_v12, %v1678_v30  ;;  %v1702_v44 = vadd.f32 %v1701_v41, %v1700_v5  ;;  %v1720_v19 = vrot.slane %v1719_v37, 2 }
 0x256   : > { %v1686_v59 = vrot.slane %v1685_v31, 1  ;;  %v1708_v60 = vrot.slane %v1707_v14, 1  ;;  %v1749_v17 = vadd.f32 %v1748_v54, %v1747_v8  ;;  %v1740_v10 = vadd.f32 %v1739_v13, %v1738_v3 }
 0x257   : > { %v1729_v28 = vrot.slane %v1728_v55, 1  ;;  %v1721_v33 = vadd.f32 %v1720_v19, %v1719_v37  ;;  %v1879_v46 = vpack.c.bf16 %v1680_v24, %v1680_v24  ;;  %v1882_v50 = vpack.c.bf16 %v1702_v44, %v1702_v44 }
 0x258   : > { %v1687_v43 = vadd.f32 %v1686_v59, %v1685_v31  ;;  %v1709_v40 = vadd.f32 %v1708_v60, %v1707_v14  ;;  %v1750_v18 = vrot.slane %v1749_v17, 1  ;;  %v1741_v4 = vrot.slane %v1740_v10, 2 }
 0x259   : > { %v1730_v48 = vadd.f32 %v1729_v28, %v1728_v55  ;;  %v1722_v0 = vrot.slane %v1721_v33, 1  ;;  %v1985_v22 = vunpack.c.l.b16 %v1879_v46  ;;  %v1988_v23 = vunpack.c.l.b16 %v1882_v50 }
 0x25a   : > { %v1751_v56 = vadd.f32 %v1750_v18, %v1749_v17  ;;  %v1880_v57 = vpack.c.bf16 %v1687_v43, %v1687_v43  ;;  %v1883_v62 = vpack.c.bf16 %v1709_v40, %v1709_v40  ;;  %v1742_v27 = vadd.f32 %v1741_v4, %v1740_v10  ;;  %v4140_v18 = vld [vmem:[#allocation8 + $0x188] ss:$12 sps:$4 sm:$0xff]  }
 0x25b   : > { %v1886_v34 = vpack.c.bf16 %v1730_v48, %v1730_v48  ;;  %v1723_v32 = vadd.f32 %v1722_v0, %v1721_v33  ;;  %v1998_v39 = vsel %vm1997_vm8, %v1988_v23, %v1985_v22  ;;  %v1693_v30 = vadd.f32 %v1692_v63, %v5105_v42  ;;  %v5375_v33 = vld [vmem:[#allocation25_spill] sm:$0xff] }
 0x25c   : > { %v1889_v5 = vpack.c.bf16 %v1751_v56, %v1751_v56  ;;  %v1986_v6 = vunpack.c.l.b16 %v1880_v57  ;;  %v1989_v7 = vunpack.c.l.b16 %v1883_v62  ;;  %v1743_v36 = vrot.slane %v1742_v27, 1  ;;  %v4143_v23 = vld [vmem:[#allocation8 + $0x19c] ss:$12 sps:$4 sm:$0xff]  }
 0x25d   : > { %v1992_v8 = vunpack.c.l.b16 %v1886_v34  ;;  %v1885_v3 = vpack.c.bf16 %v1723_v32, %v1723_v32  ;;  %v1694_v9 = vrot.slane %v1693_v30, 1  ;;  %v1714_v12 = vadd.f32 %v1713_v1, %v5107_v58 }
 0x25e   : > { %v1995_v41 = vunpack.c.l.b16 %v1889_v5  ;;  %v2003_v37 = vsel %vm1997_vm8, %v1989_v7, %v1986_v6  ;;  %v1744_v31 = vadd.f32 %v1743_v36, %v1742_v27  ;;  %v1734_v14 = vrot.slane %v5111_v29, 2  ;;  %v4141_v5 = vld [vmem:[#allocation8 + $0x198] ss:$12 sps:$4 sm:$0xff]   ;;  %v4144_v6 = vld [vmem:[#allocation8 + $0x1a0] ss:$12 sps:$4 sm:$0xff]  }
 0x25f   : > { %v2004_v54 = vsel %vm1999_vm9, %v1992_v8, %v2003_v37  ;;  %v1991_v42 = vunpack.c.l.b16 %v1885_v3  ;;  %v1695_v63 = vadd.f32 %v1694_v9, %v1693_v30  ;;  %v1715_v13 = vrot.slane %v1714_v12, 1  ;;  %v4147_v9 = vld [vmem:[#allocation8 + $0x1b4] ss:$12 sps:$4 sm:$0xff]  }
 0x260   : > { %v2005_v55 = vsel %vm2001_vm10, %v1995_v41, %v2004_v54  ;;  %v1888_v24 = vpack.c.bf16 %v1744_v31, %v1744_v31  ;;  %v1735_v44 = vadd.f32 %v1734_v14, %v5111_v29  ;;  %v1754_v58 = vadd.f32 %v1753_v26, %v5100_v61  ;;  %v4137_v26 = vld [vmem:[#allocation8 + $0x180] ss:$12 sps:$4 sm:$0xff]  }
 0x261   : > { %v2010_v1 = vpack.c.b16 %v2005_v55, %v2005_v55  ;;  %v2000_v19 = vsel %vm1999_vm9, %v1991_v42, %v1998_v39  ;;  %v1716_v59 = vadd.f32 %v1715_v13, %v1714_v12  ;;  %v1881_v60 = vpack.c.bf16 %v1695_v63, %v1695_v63 }
 0x262   : > { %v1994_v17 = vunpack.c.l.b16 %v1888_v24  ;;  %v1736_v10 = vrot.slane %v1735_v44, 1  ;;  %v1755_v28 = vrot.slane %v1754_v58, 2  ;;  %v1793_v46 = vadd.f32 %v5149_v16, %v5375_v33 }
 0x263   : > { %2386 = vmatprep.mubr.bf16.mxu0 %v2010_v1  ;;  %2468 = vmatprep.mubr.bf16.mxu1 %v2010_v1  ;;  %v1884_v50 = vpack.c.bf16 %v1716_v59, %v1716_v59  ;;  %v1987_v43 = vunpack.c.l.b16 %v1881_v60  ;;  %v1802_v29 = vsel %vm1673_vm6, %v5153_v21, 0.0  ;;  %v1823_v61 = vsel %vm1673_vm6, %v5159_v47, 0.0  ;;  %v4148_v1 = vld [vmem:[#allocation8 + $0x1b8] ss:$12 sps:$4 sm:$0xff]  }
 0x264   : > { %v2002_v40 = vsel %vm2001_vm10, %v1994_v17, %v2000_v19  ;;  %v1737_v4 = vadd.f32 %v1736_v10, %v1735_v44  ;;  %v1756_v48 = vadd.f32 %v1755_v28, %v1754_v58  ;;  %v1803_v0 = vrot.slane %v1802_v29, 4  ;;  %v4151_v10 = vld [vmem:[#allocation8 + $0x1cc] ss:$12 sps:$4 sm:$0xff]  }
 0x265   : > { %v2009_v22 = vpack.c.b16 %v2002_v40, %v2002_v40  ;;  %v1990_v16 = vunpack.c.l.b16 %v1884_v50  ;;  %v1824_v56 = vrot.slane %v1823_v61, 4  ;;  %v1844_v57 = vsel %vm1673_vm6, %v5162_v35, 0.0 }
 0x266   : > { %v1757_v62 = vrot.slane %v1756_v48, 1  ;;  %v1887_v27 = vpack.c.bf16 %v1737_v4, %v1737_v4  ;;  %v1804_v21 = vadd.f32 %v1803_v0, %v1802_v29  ;;  %v1845_v34 = vrot.slane %v1844_v57, 4 }
 0x267   : > { %2387 = vmatmul.mubr.bf16.vlgmr.msra.gmra.mrb[12].mxu0 %v2009_v22  ;;  %2469 = vmatmul.mubr.bf16.vlgmr.msra.gmra.mrb[12].mxu1 %v2009_v22  ;;  %v2006_v47 = vsel %vm1997_vm8, %v1990_v16, %v1987_v43  ;;  %v1825_v32 = vadd.f32 %v1824_v56, %v1823_v61  ;;  %v1865_v39 = vsel %vm1673_vm6, %v1793_v46, 0.0  ;;  %v1798_v30 = vrot.slane %v5084_v20, 2 }
 0x268   : > { %2396 = vmatpush1.bf16.msra.mxu0 %v4137_v26  ;;  %3738 = vmatpush3.bf16.msra.mxu1 %v4140_v18  ;;  %v1758_v7 = vadd.f32 %v1757_v62, %v1756_v48  ;;  %v1993_v36 = vunpack.c.l.b16 %v1887_v27  ;;  %v1805_v35 = vrot.slane %v1804_v21, 2  ;;  %v1846_v8 = vadd.f32 %v1845_v34, %v1844_v57  ;;  %v4152_v48 = vld [vmem:[#allocation8 + $0x1d0] ss:$12 sps:$4 sm:$0xff]  }
 0x269   : > { %2397 = vmatprep.subr.bf16.mxu0 %v4143_v23  ;;  %v5376_v3 = vmov 0.0   ;;  %v1826_v12 = vrot.slane %v1825_v32, 2  ;;  %v1866_v41 = vrot.slane %v1865_v39, 4  ;;  %v1799_v37 = vadd.f32 %v1798_v30, %v5084_v20  ;;  %v4145_v20 = vld [vmem:[#allocation8 + $0x1b0] ss:$12 sps:$4 sm:$0xff]  }
 0x26a   : > { %3739 = vmatprep.subr.bf16.mxu1 %v5376_v3  ;;  %v1819_v31 = vrot.slane %v5086_v38, 2  ;;  %v5377_v14 = vmov 0   ;;  %3747 = vmatprep.mubr.msk.bf16.mxu1 %vm4528_vm0, %v5376_v3  ;;  %v1890_v54 = vpack.c.bf16 %v1758_v7, %v1758_v7  ;;  %v2007_v42 = vsel %vm1999_vm9, %v1993_v36, %v2006_v47 }
 0x26b   : > { %2427 = vmatprep.mubr.bf16.mxu0 %v5377_v14  ;;  %v1806_v63 = vadd.f32 %v1805_v35, %v1804_v21  ;;  %v1847_v13 = vrot.slane %v1846_v8, 2  ;;  %v1827_v55 = vadd.f32 %v1826_v12, %v1825_v32  ;;  %v1867_v24 = vadd.f32 %v1866_v41, %v1865_v39  ;;  %v4158_v12 = vld [vmem:[#allocation10 + $0x4] ss:$12 sps:$4 sm:$0xff]   ;;  %v4159_v41 = vld [vmem:[#allocation10 + $0xc8] ss:$12 sps:$4 sm:$0xff]  }
 0x26c   : > { %v1800_v44 = vrot.slane %v1799_v37, 1  ;;  %v1820_v58 = vadd.f32 %v1819_v31, %v5086_v38  ;;  %2398 = vmatpush1.bf16.msra.mxu0 %v4141_v5  ;;  %3740 = vmatpush3.bf16.msra.mxu1 %v4144_v6  ;;  %v1996_v19 = vunpack.c.l.b16 %v1890_v54  ;;  %v1837_v17 = vsel %vm1673_vm6, %v5062_v15, 0.0  ;;  %v4149_v15 = vld [vmem:[#allocation8 + $0x1c8] ss:$12 sps:$4 sm:$0xff]  }
 0x26d   : > { %v1807_v59 = vrot.slane %v1806_v63, 1  ;;  %v1848_v60 = vadd.f32 %v1847_v13, %v1846_v8  ;;  %2399 = vmatprep.subr.bf16.mxu0 %v4147_v9  ;;  %3741 = vmatprep.subr.bf16.mxu1 %v5376_v3  ;;  %v1828_v28 = vrot.slane %v1827_v55, 1  ;;  %v1868_v33 = vrot.slane %v1867_v24, 2  ;;  %v5378_v8 = vld [vmem:[#allocation20_spill] sm:$0xff] }
 0x26e   : > { %v1801_v46 = vadd.f32 %v1800_v44, %v1799_v37  ;;  %v1821_v50 = vrot.slane %v1820_v58, 1  ;;  %v2008_v38 = vsel %vm2001_vm10, %v1996_v19, %v2007_v42  ;;  %v1838_v61 = vrot.slane %v1837_v17, 4  ;;  %v4156_v19 = vld [vmem:[#allocation10] ss:$12 sps:$4 sm:$0xff]  }
 0x26f   : > { %v1808_v43 = vadd.f32 %v1807_v59, %v1806_v63  ;;  %v1849_v29 = vrot.slane %v1848_v60, 1  ;;  %v5220_v26 = vpack.c.b16 %v2008_v38, %v2008_v38  ;;  %v1829_v40 = vadd.f32 %v1828_v28, %v1827_v55  ;;  %v4164_v38 = vld [vmem:[#allocation10 + $0xe0] ss:$12 sps:$4 sm:$0xff]  }
 0x270   : > { %v1869_v18 = vadd.f32 %v1868_v33, %v1867_v24  ;;  %v1822_v4 = vadd.f32 %v1821_v50, %v1820_v58  ;;  %2400 = vmatpush1.bf16.msra.mxu0 %v4145_v20  ;;  %3742 = vmatpush3.bf16.msra.mxu1 %v4148_v1  ;;  %v1839_v23 = vadd.f32 %v1838_v61, %v1837_v17  ;;  %v1858_v16 = vsel %vm1673_vm6, %v5064_v25, 0.0  ;;  %v5380_v20 = vld [vmem:[#allocation21_spill] sm:$0xff]  ;;  %v5381_v1 = vld [vmem:[#allocation22_spill] sm:$0xff]  ;;  %v4163_v50 = vld [vmem:[#allocation10 + $0x1c] ss:$12 sps:$4 sm:$0xff]  }
 0x271   : > { %v1850_v0 = vadd.f32 %v1849_v29, %v1848_v60  ;;  %v2517_v22 = vpack.c.bf16 %v1808_v43, %v1808_v43  ;;  %2401 = vmatprep.subr.bf16.mxu0 %v4151_v10  ;;  %3743 = vmatprep.subr.bf16.mxu1 %v5376_v3  ;;  %v2520_v57 = vpack.c.bf16 %v1829_v40, %v1829_v40  ;;  %v1859_v62 = vrot.slane %v1858_v16, 4  ;;  %v4160_v17 = vld [vmem:[#allocation10 + $0x8] ss:$12 sps:$4 sm:$0xff]  }
 0x272   : > { %v1870_v56 = vrot.slane %v1869_v18, 1  ;;  %v2516_v27 = vpack.c.bf16 %v1801_v46, %v1801_v46  ;;  %v1840_v47 = vrot.slane %v1839_v23, 2  ;;  %v2519_v32 = vpack.c.bf16 %v1822_v4, %v1822_v4 }
 0x273   : > { %v2523_v21 = vpack.c.bf16 %v1850_v0, %v1850_v0  ;;  %v2623_v34 = vunpack.c.l.b16 %v2517_v22  ;;  %v2626_v30 = vunpack.c.l.b16 %v2520_v57  ;;  %v1860_v5 = vadd.f32 %v1859_v62, %v1858_v16  ;;  %v4168_v0 = vld [vmem:[#allocation10 + $0x34] ss:$12 sps:$4 sm:$0xff]  }
 0x274   : > { %v1871_v39 = vadd.f32 %v1870_v56, %v1869_v18  ;;  %v2622_v6 = vunpack.c.l.b16 %v2516_v27  ;;  %2402 = vmatpush1.bf16.msra.mxu0 %v4149_v15  ;;  %3744 = vmatpush3.bf16.msra.mxu1 %v4152_v48  ;;  %v1841_v36 = vadd.f32 %v1840_v47, %v1839_v23  ;;  %v2625_v25 = vunpack.c.l.b16 %v2519_v32  ;;  %v4161_v18 = vld [vmem:[#allocation10 + $0x18] ss:$12 sps:$4 sm:$0xff]   ;;  %v4165_v48 = vld [vmem:[#allocation10 + $0x20] ss:$12 sps:$4 sm:$0xff]  }
 0x275   : > { %v2629_v7 = vunpack.c.l.b16 %v2523_v21  ;;  %v1813_v35 = vadd.f32 %v1812_v52, %v5127_v11  ;;  %v5379_v9 = vcombine.high %v5378_v8, %v5378_v8  ;;  %3745 = vmatprep.subr.bf16.mxu1 %v5376_v3  ;;  %v2637_v31 = vsel %vm1997_vm8, %v2626_v30, %v2623_v34  ;;  %v4169_v56 = vld [vmem:[#allocation10 + $0xf8] ss:$12 sps:$4 sm:$0xff]   ;;  %v4166_v34 = vld [vmem:[#allocation10 + $0x30] ss:$12 sps:$4 sm:$0xff]  }
 0x276   : > { %v2526_v37 = vpack.c.bf16 %v1871_v39, %v1871_v39  ;;  %v1861_v54 = vrot.slane %v1860_v5, 2  ;;  %v1834_v42 = vadd.f32 %v1833_v53, %v5129_v49  ;;  %v1842_v11 = vrot.slane %v1841_v36, 1  ;;  %v4170_v32 = vld [vmem:[#allocation10 + $0x38] ss:$12 sps:$4 sm:$0xff]   ;;  %v4175_v8 = vld [vmem:[#allocation10 + $0x50] ss:$12 sps:$4 sm:$0xff]  }
 0x277   : > { %3525 = vmatprep.subr.msk.bf16.mxu0 %vm832_vm1, %v5379_v9  ;;  %v2638_v63 = vsel %vm1999_vm9, %v2629_v7, %v2637_v31  ;;  %v2634_v52 = vsel %vm1997_vm8, %v2625_v25, %v2622_v6  ;;  %v1814_v13 = vrot.slane %v1813_v35, 1  ;;  %v1854_v58 = vrot.slane %v5139_v45, 2  ;;  %v4173_v39 = vld [vmem:[#allocation10 + $0x4c] ss:$12 sps:$4 sm:$0xff]   ;;  %v4174_v6 = vld [vmem:[#allocation10 + $0x110] ss:$12 sps:$4 sm:$0xff]  }
 0x278   : > { %v2632_v55 = vunpack.c.l.b16 %v2526_v37  ;;  %v1862_v24 = vadd.f32 %v1861_v54, %v1860_v5  ;;  %v1835_v44 = vrot.slane %v1834_v42, 1  ;;  %2404 = vmatpush1.bf16.msra.mxu0 %v5380_v20  ;;  %3746 = vmatpush3.bf16.msra.mxu1 %v5381_v1  ;;  %v1843_v59 = vadd.f32 %v1842_v11, %v1841_v36  ;;  %v4171_v25 = vld [vmem:[#allocation10 + $0x48] ss:$12 sps:$4 sm:$0xff]   ;;  %v4178_v9 = vld [vmem:[#allocation10 + $0x64] ss:$12 sps:$4 sm:$0xff]  }
 0x279   : > { %v1815_v60 = vadd.f32 %v1814_v13, %v1813_v35  ;;  %v1874_v49 = vadd.f32 %v1873_v51, %v5121_v2  ;;  %2988 = vmatprep.subr.bf16.mxu1 %v4158_v12  ;;  %3681 = vmatprep.subr.bf16.mxu0 %v4159_v41  ;;  %v1855_v33 = vadd.f32 %v1854_v58, %v5139_v45  ;;  %v4179_v12 = vld [vmem:[#allocation10 + $0x128] ss:$12 sps:$4 sm:$0xff]   ;;  %v4176_v37 = vld [vmem:[#allocation10 + $0x60] ss:$12 sps:$4 sm:$0xff]   ;;  %v4189_v13 = vld [vmem:[#allocation10 + $0x158] ss:$12 sps:$4 sm:$0xff]  }
 0x27a   : > { %v2639_v53 = vsel %vm2001_vm10, %v2632_v55, %v2638_v63  ;;  %v1863_v10 = vrot.slane %v1862_v24, 1  ;;  %v1836_v28 = vadd.f32 %v1835_v44, %v1834_v42  ;;  %v2522_v43 = vpack.c.bf16 %v1843_v59, %v1843_v59  ;;  %v4180_v31 = vld [vmem:[#allocation10 + $0x68] ss:$12 sps:$4 sm:$0xff]   ;;  %v4184_v42 = vld [vmem:[#allocation10 + $0x140] ss:$12 sps:$4 sm:$0xff]  }
 0x27b   : > { %v2644_v46 = vpack.c.b16 %v2639_v53, %v2639_v53  ;;  %v1875_v29 = vrot.slane %v1874_v49, 2  ;;  %v2518_v61 = vpack.c.bf16 %v1815_v60, %v1815_v60  ;;  %3526 = vmatmul.mubr.msk.bf16.vlgmr.msra.gmra.mrb[12].mxu0 %vm828_vm2, %v5220_v26  ;;  %3748 = vmatmul.mubr.msk.bf16.vlgmr.msra.gmra.mrb[16].mxu1 %vm828_vm2, %v5220_v26  ;;  %v1856_v51 = vrot.slane %v1855_v33, 1  ;;  %v4183_v54 = vld [vmem:[#allocation10 + $0x7c] ss:$12 sps:$4 sm:$0xff]   ;;  %v4181_v63 = vld [vmem:[#allocation10 + $0x78] ss:$12 sps:$4 sm:$0xff]  }
 0x27c   : > { %v1864_v2 = vadd.f32 %v1863_v10, %v1862_v24  ;;  %v2521_v40 = vpack.c.bf16 %v1836_v28, %v1836_v28  ;;  %2989 = vmatpush1.bf16.msra.mxu1 %v4156_v19  ;;  %v2628_v4 = vunpack.c.l.b16 %v2522_v43  ;;  %3682 = vmatpush3.bf16.msra.mxu0 %v4160_v17  ;;  %v4185_v11 = vld [vmem:[#allocation10 + $0x80] ss:$12 sps:$4 sm:$0xff]   ;;  %v4186_v55 = vld [vmem:[#allocation10 + $0x90] ss:$12 sps:$4 sm:$0xff]   ;;  %v4190_v24 = vld [vmem:[#allocation10 + $0x98] ss:$12 sps:$4 sm:$0xff]  }
 0x27d   : > { %3020 = vmatprep.mubr.bf16.mxu1 %v2644_v46  ;;  %v1876_v45 = vadd.f32 %v1875_v29, %v1874_v49  ;;  %v2624_v15 = vunpack.c.l.b16 %v2518_v61  ;;  %3102 = vmatprep.mubr.bf16.mxu0 %v2644_v46  ;;  %v1857_v23 = vadd.f32 %v1856_v51, %v1855_v33  ;;  %v4193_v44 = vld [vmem:[#allocation10 + $0xac] ss:$12 sps:$4 sm:$0xff]   ;;  %v4194_v58 = vld [vmem:[#allocation10 + $0x170] ss:$12 sps:$4 sm:$0xff]   ;;  %v4191_v20 = vld [vmem:[#allocation10 + $0xa8] ss:$12 sps:$4 sm:$0xff]  }
 0x27e   : > { %v2525_v22 = vpack.c.bf16 %v1864_v2, %v1864_v2  ;;  %v2627_v16 = vunpack.c.l.b16 %v2521_v40  ;;  %2990 = vmatprep.subr.bf16.mxu1 %v4163_v50  ;;  %3683 = vmatprep.subr.bf16.mxu0 %v4164_v38  ;;  %v2635_v26 = vsel %vm1999_vm9, %v2628_v4, %v2634_v52  ;;  %v4188_v52 = vld [vmem:[#allocation10 + $0x94] ss:$12 sps:$4 sm:$0xff]   ;;  %v4195_v1 = vld [vmem:[#allocation10 + $0xb0] ss:$12 sps:$4 sm:$0xff]   ;;  %v4200_v17 = vld [vmem:[#allocation10 + $0xd8] ss:$12 sps:$4 sm:$0xff]  }
 0x27f   : > { %v1877_v57 = vrot.slane %v1876_v45, 1  ;;  %v2524_v27 = vpack.c.bf16 %v1857_v23, %v1857_v23  ;;  %v4198_v19 = vld [vmem:[#allocation10 + $0xc4] ss:$12 sps:$4 sm:$0xff]   ;;  %v4196_v59 = vld [vmem:[#allocation10 + $0xc0] ss:$12 sps:$4 sm:$0xff]  }
 0x280   : > { %v2631_v62 = vunpack.c.l.b16 %v2525_v22  ;;  %v2640_v21 = vsel %vm1997_vm8, %v2627_v16, %v2624_v15  ;;  %2991 = vmatpush1.bf16.msra.mxu1 %v4161_v18  ;;  %3684 = vmatpush3.bf16.msra.mxu0 %v4165_v48  ;;  %v4199_v60 = vld [vmem:[#allocation10 + $0x188] ss:$12 sps:$4 sm:$0xff]   ;;  %v4203_v10 = vld [vmem:[#allocation10 + $0x1a0] ss:$12 sps:$4 sm:$0xff]   ;;  %v4204_v33 = vld [vmem:[#allocation10 + $0xf0] ss:$12 sps:$4 sm:$0xff]  }
 0x281   : > { %v1878_v47 = vadd.f32 %v1877_v57, %v1876_v45  ;;  %2992 = vmatprep.subr.bf16.mxu1 %v4168_v0  ;;  %v2630_v5 = vunpack.c.l.b16 %v2524_v27  ;;  %3685 = vmatprep.subr.bf16.mxu0 %v4169_v56  ;;  %v4202_v49 = vld [vmem:[#allocation10 + $0xdc] ss:$12 sps:$4 sm:$0xff]   ;;  %v4206_v28 = vld [vmem:[#allocation10 + $0xf4] ss:$12 sps:$4 sm:$0xff]   ;;  %v4207_v46 = vld [vmem:[#allocation10 + $0x1b8] ss:$12 sps:$4 sm:$0xff]  }
 0x282   : > { %v2636_v30 = vsel %vm2001_vm10, %v2631_v62, %v2635_v26  ;;  %v4210_v50 = vld [vmem:[#allocation10 + $0x10c] ss:$12 sps:$4 sm:$0xff]   ;;  %v4208_v38 = vld [vmem:[#allocation10 + $0x108] ss:$12 sps:$4 sm:$0xff]   ;;  %v4211_v43 = vld [vmem:[#allocation10 + $0x1d0] ss:$12 sps:$4 sm:$0xff]  }
 0x283   : > { %v2527_v7 = vpack.c.bf16 %v1878_v47, %v1878_v47  ;;  %v2641_v36 = vsel %vm1999_vm9, %v2630_v5, %v2640_v21  ;;  %v2643_v53 = vpack.c.b16 %v2636_v30, %v2636_v30  ;;  %v4214_v29 = vld [vmem:[#allocation10 + $0x124] ss:$12 sps:$4 sm:$0xff]   ;;  %v4215_v61 = vld [vmem:[#allocation10 + $0x1e8] ss:$0 sps:$4 sm:$0x33]  }
 0x284   : > { %2993 = vmatpush1.bf16.msra.mxu1 %v4166_v34  ;;  %3686 = vmatpush3.bf16.msra.mxu0 %v4170_v32  ;;  %v4212_v2 = vld [vmem:[#allocation10 + $0x120] ss:$12 sps:$4 sm:$0xff]   ;;  %v4218_v51 = vld [vmem:[#allocation10 + $0x13c] ss:$12 sps:$4 sm:$0xff]   ;;  %v2986_v40 = vsel %vm832_vm1, %v4215_v61, 0 }
 0x285   : > { %v2633_v35 = vunpack.c.l.b16 %v2527_v7  ;;  %2994 = vmatprep.subr.bf16.mxu1 %v4173_v39  ;;  %3687 = vmatprep.subr.bf16.mxu0 %v4174_v6  ;;  %v4216_v18 = vld [vmem:[#allocation10 + $0x138] ss:$12 sps:$4 sm:$0xff]   ;;  %v4221_v4 = vld [vmem:[#allocation10 + $0x154] ss:$12 sps:$4 sm:$0xff]   ;;  %v4219_v15 = vld [vmem:[#allocation10 + $0x150] ss:$12 sps:$4 sm:$0xff]  }
 0x286   : > { %v4224_v48 = vld [vmem:[#allocation10 + $0x16c] ss:$12 sps:$4 sm:$0xff]   ;;  %v4222_v0 = vld [vmem:[#allocation10 + $0x168] ss:$12 sps:$4 sm:$0xff]   ;;  %v4231_v26 = vld [vmem:[#allocation10 + $0x1b0] ss:$12 sps:$4 sm:$0xff]  }
 0x287   : > { %v5256_v41 = vsel %vm2001_vm10, %v2633_v35, %v2641_v36  ;;  %v4225_v22 = vld [vmem:[#allocation10 + $0x180] ss:$12 sps:$4 sm:$0xff]   ;;  %v4230_v23 = vld [vmem:[#allocation10 + $0x19c] ss:$12 sps:$4 sm:$0xff]   ;;  %v4228_v16 = vld [vmem:[#allocation10 + $0x198] ss:$12 sps:$4 sm:$0xff]  }
 0x288   : > { %2995 = vmatpush1.bf16.msra.mxu1 %v4171_v25  ;;  %3688 = vmatpush3.bf16.msra.mxu0 %v4175_v8  ;;  %v2645_v45 = vpack.c.b16 %v5256_v41, %v5256_v41  ;;  %v4233_v56 = vld [vmem:[#allocation10 + $0x1b4] ss:$12 sps:$4 sm:$0xff]   ;;  %v4236_v57 = vld [vmem:[#allocation10 + $0x1cc] ss:$12 sps:$4 sm:$0xff]  }
 0x289   : > { %2996 = vmatprep.subr.bf16.mxu1 %v4178_v9  ;;  %3689 = vmatprep.subr.bf16.mxu0 %v4179_v12  ;;  %v2608_v62 = vld [vmem:[#allocation10 + $0x1e0] sm:$0x33]  ;;  %v4234_v27 = vld [vmem:[#allocation10 + $0x1c8] ss:$12 sps:$4 sm:$0xff]  }
 0x28a   : > { %v3589_v21 = vcombine.high %v2608_v62, %v2608_v62  ;;  %v3588_v34 = vcombine.low %v2608_v62, %v2608_v62 }
 0x28c   : > { %2997 = vmatpush1.bf16.msra.mxu1 %v4176_v37  ;;  %3690 = vmatpush3.bf16.msra.mxu0 %v4180_v31  ;;  %v2980_v47 = vsel %vm832_vm1, %v3588_v34, 0 }
 0x28d   : > { %2998 = vmatprep.subr.bf16.mxu1 %v4183_v54  ;;  %3691 = vmatprep.subr.bf16.mxu0 %v4184_v42 }
 0x290   : > { %2999 = vmatpush1.bf16.msra.mxu1 %v4181_v63  ;;  %3692 = vmatpush3.bf16.msra.mxu0 %v4185_v11 }
 0x291   : > { %3000 = vmatprep.subr.bf16.mxu1 %v4188_v52  ;;  %3693 = vmatprep.subr.bf16.mxu0 %v4189_v13 }
 0x294   : > { %3001 = vmatpush1.bf16.msra.mxu1 %v4186_v55  ;;  %3694 = vmatpush3.bf16.msra.mxu0 %v4190_v24 }
 0x295   : > { %3002 = vmatprep.subr.bf16.mxu1 %v4193_v44  ;;  %3695 = vmatprep.subr.bf16.mxu0 %v4194_v58 }
 0x298   : > { %3003 = vmatpush1.bf16.msra.mxu1 %v4191_v20  ;;  %3696 = vmatpush3.bf16.msra.mxu0 %v4195_v1 }
 0x299   : > { %3004 = vmatprep.subr.bf16.mxu1 %v4198_v19  ;;  %3751 = vmatprep.subr.bf16.mxu0 %v5376_v3 }
 0x29b   : > { %3103 = vmatmul.mubr.bf16.vlgmr.msra.gmra.mrb[16].mxu0 %v2643_v53 }
 0x29c   : > { %3005 = vmatpush1.bf16.msra.mxu1 %v4196_v59  ;;  %3752 = vmatpush3.bf16.msra.mxu0 %v4199_v60 }
 0x29d   : > { %3006 = vmatprep.subr.bf16.mxu1 %v4202_v49  ;;  %3753 = vmatprep.subr.bf16.mxu0 %v5376_v3 }
 0x29e   : > { %3761 = vmatprep.mubr.msk.bf16.mxu0 %vm4528_vm0, %v5376_v3 }
 0x2a0   : > { %3007 = vmatpush1.bf16.msra.mxu1 %v4200_v17  ;;  %3754 = vmatpush3.bf16.msra.mxu0 %v4203_v10 }
 0x2a1   : > { %3008 = vmatprep.subr.bf16.mxu1 %v4206_v28  ;;  %3755 = vmatprep.subr.bf16.mxu0 %v5376_v3 }
 0x2a4   : > { %3009 = vmatpush1.bf16.msra.mxu1 %v4204_v33  ;;  %3756 = vmatpush3.bf16.msra.mxu0 %v4207_v46 }
 0x2a5   : > { %3010 = vmatprep.subr.bf16.mxu1 %v4210_v50  ;;  %3757 = vmatprep.subr.bf16.mxu0 %v5376_v3 }
 0x2a8   : > { %3011 = vmatpush1.bf16.msra.mxu1 %v4208_v38  ;;  %3758 = vmatpush3.bf16.msra.mxu0 %v4211_v43 }
 0x2a9   : > { %3012 = vmatprep.subr.bf16.mxu1 %v4214_v29  ;;  %3759 = vmatprep.subr.bf16.mxu0 %v5376_v3  ;;  %v4227_v3 = vld [vmem:[#allocation10 + $0x184] ss:$12 sps:$4 sm:$0xff]  }
 0x2ac   : > { %3013 = vmatpush1.bf16.msra.mxu1 %v4212_v2  ;;  %3760 = vmatpush3.bf16.msra.mxu0 %v2986_v40 }
 0x2ad   : > { %3014 = vmatprep.subr.bf16.mxu1 %v4218_v51 }
 0x2af   : > { %3762 = vmatmul.mubr.msk.bf16.vlgmr.msra.gmra.mrb[20].mxu0 %vm828_vm2, %v2645_v45 }
 0x2b0   : > { %3015 = vmatpush1.bf16.msra.mxu1 %v4216_v18 }
 0x2b1   : > { %3016 = vmatprep.subr.bf16.mxu1 %v4221_v4 }
 0x2b4   : > { %3017 = vmatpush1.bf16.msra.mxu1 %v4219_v15 }
 0x2b5   : > { %3018 = vmatprep.subr.bf16.mxu1 %v4224_v48 }
 0x2b8   : > { %3019 = vmatpush1.bf16.msra.mxu1 %v4222_v0 }
 0x2b9   : > { %3029 = vmatprep.subr.bf16.mxu1 %v4227_v3 }
 0x2bb   : > { %3021 = vmatmul.mubr.bf16.vlgmr.msra.gmra.mrb[20].mxu1 %v2643_v53 }
 0x2bc   : > { %3030 = vmatpush1.bf16.msra.mxu1 %v4225_v22  ;;  %3061 = vmatprep.mubr.bf16.mxu1 %v5377_v14 }
 0x2bd   : > { %3031 = vmatprep.subr.bf16.mxu1 %v4230_v23 }
 0x2c0   : > { %3032 = vmatpush1.bf16.msra.mxu1 %v4228_v16 }
 0x2c1   : > { %3033 = vmatprep.subr.bf16.mxu1 %v4233_v56 }
 0x2c4   : > { %3034 = vmatpush1.bf16.msra.mxu1 %v4231_v26 }
 0x2c5   : > { %3035 = vmatprep.subr.bf16.mxu1 %v4236_v57 }
 0x2c6   : > { %v3160_v58 = vpop.permute.xlu0 %3159 }
 0x2c8   : > { %3036 = vmatpush1.bf16.msra.mxu1 %v4234_v27 }
 0x2c9   : > { %3591 = vmatprep.subr.msk.bf16.mxu1 %vm832_vm1, %v3589_v21 }
 0x2cc   : > { %3038 = vmatpush1.bf16.msra.mxu1 %v2980_v47 }
 0x2cf   : > { %3592 = vmatmul.mubr.msk.bf16.vlgmr.msra.gmra.mrb[20].mxu1 %vm828_vm2, %v2645_v45 }
 0x33a   : > { %v3669_v14 = vpop.f32.mrb[12].mxu1 }
 0x33b   : > { %v3670_v32 = vpop.f32.mrb[13].mxu1 }
 0x33c   : > { %v3671_v39 = vadd.f32 %v3670_v32, %v3669_v14  ;;  %v3672_v30 = vpop.f32.mrb[14].mxu1 }
 0x33d   : > { %v3673_v5 = vpop.f32.mrb[15].mxu1 }
 0x34e   : > { %v2429_v6 = vpop.f32.mrb[12].mxu0  ;;  %v2510_v7 = vpop.f32.mrb[16].mxu1 }
 0x34f   : > { %v2511_v36 = vadd.f32 %v3671_v39, %v2510_v7  ;;  %v2431_v25 = vpop.f32.mrb[13].mxu0  ;;  %v3749_v35 = vpop.f32.mrb[17].mxu1 }
 0x350   : > { %v2433_v8 = vpop.f32.mrb[14].mxu0  ;;  %v2513_v9 = vpop.f32.mrb[18].mxu1 }
 0x351   : > { %v2434_v12 = vpop.f32.mrb[15].mxu0  ;;  %v3750_v41 = vpop.f32.mrb[19].mxu1 }
 0x36e   : > { %v3697_v37 = vpop.f32.mrb[16].mxu0 }
 0x36f   : > { %v3698_v31 = vpop.f32.mrb[17].mxu0 }
 0x370   : > { %v3699_v54 = vadd.f32 %v3698_v31, %v3697_v37  ;;  %v3700_v42 = vpop.f32.mrb[18].mxu0 }
 0x371   : > { %v3701_v63 = vpop.f32.mrb[19].mxu0 }
 0x382   : > { %v3144_v11 = vpop.f32.mrb[20].mxu0 }
 0x383   : > { %v3145_v52 = vadd.f32 %v3699_v54, %v3144_v11  ;;  %v3763_v13 = vpop.f32.mrb[21].mxu0 }
 0x384   : > { %v3147_v55 = vpop.f32.mrb[22].mxu0 }
 0x385   : > { %v3152_v24 = vsub.f32 %v2511_v36, %v3145_v52  ;;  %v3764_v44 = vpop.f32.mrb[23].mxu0 }
 0x387   : > { %v3155_v20 = vmul.f32 0.0030864198, %v3152_v24 }
 0x389   : > { %v3164_v1 = vadd.f32 %v3160_v58, %v3155_v20 }
 0x38b   : > { %3170 = vst.msk [vmem:[%s408_s25 + $0x8] sm:$0xf] %vm1688_vm7, %v3164_v1 }
 0x3a2   : > { %v3063_v19 = vpop.f32.mrb[20].mxu1 }
 0x3a3   : > { %v3150_v59 = vsub.f32 %v2429_v6, %v3063_v19  ;;  %v3065_v60 = vpop.f32.mrb[21].mxu1 }
 0x3a4   : > { %v3151_v49 = vsub.f32 %v2431_v25, %v3065_v60  ;;  %v3067_v53 = vpop.f32.mrb[22].mxu1 }
 0x3a5   : > { %v3153_v17 = vmul.f32 0.0030864198, %v3150_v59  ;;  %v3068_v10 = vpop.f32.mrb[23].mxu1 }
 0x3a6   : > { %v3154_v28 = vmul.f32 0.0030864198, %v3151_v49 }
 0x3a7   : > { %v3162_v33 = vadd.f32 %v3160_v58, %v3153_v17 }
 0x3a8   : > { %v3163_v46 = vadd.f32 %v3160_v58, %v3154_v28 }
 0x3aa   : > { %v3167_v50 = vcombine.low %v3162_v33, %v3163_v46 }
 0x3ac   : > { %3169 = vst [vmem:[%s408_s25] sm:$0xff] %v3167_v50 }
 0x3ad   : > { %4450 = shalt.err (!%p4447_p3)
}
 0x3ae   : > { %s4451_s17 = scalar_lea.hbm %s5280_s9, 192  ;;  %s4455_s12 = scalar_lea.hbm %s5332_s8, 384 }
 0x3af   : > { %p4452_p4 = scmp.ne.s32.totalorder %s5280_s9, %s4451_s17  ;;  %p4456_p8 = scmp.lt.u32.totalorder %s5280_s9, %s5332_s8 }
 0x3b0   : > { %p4457_p6 = scmp.lt.u32.totalorder %s4455_s12, %s4451_s17  ;;  %p4459_p5 = scmp.lt.u32.totalorder %s4451_s17, %s5280_s9 }
 0x3b1   : > { %p4453_p10 = pnand %p4452_p4, %p5382_p9 }
 0x3b2   : > { %p4458_p7 = por %p4457_p6, %p4456_p8 }
 0x3b3   : > { %p4454_p11 = pneg %p4453_p10 }
 0x3b4   : > { %p4460_p12 = por %p4459_p5, %p4458_p7 }
 0x3b6   : > { %p4461_p1 = pnand %p4460_p12, %p4454_p11 }
 0x3b8   : > { %4464 = shalt.err (!%p4461_p1)
}
 0x3b9   : > { %3811 = dma.vmem_to_hbm [thread:$0]  (%p5382_p9), %s5282_s19, 192, %s5280_s9, %s3172_s22  }
 0x3ba PF: > { %s3198_s21 = sand.u32 1, %s4503_s27   ;;  %p5383_p13 = scmp.ne.s32.totalorder %s5352_s16, 0 }
 0x3bb   : > { %p5384_p0 = scmp.ge.s32.totalorder %s4515_s30, 2  ;;  %s3199_s15 = scalar_lea.sflag [#allocation4], %s3198_s21 }
 0x3bd   : > { %p3837_p2 = pnand %p5384_p0, %p5383_p13 }
 0x3bf   : > { %4498 = dma.done.wait (!%p3837_p2), %s3199_s15, 192  }
 0x3c0   : > { %4500 = vsyncadd (!%p3837_p2), %s3199_s15, 4294967104  ;;  %p24_p3 = scmp.ge.s32.totalorder %s4769_s23, 4   ;;  %s5385_s27 = smov %s4507_s28 }
 0x3c1   : > { %s5386_s28 = smov %s4511_s29  ;;  %s5387_s29 = smov %s4780_s18 }
 0x3c2   : > { %s5388_s30 = smov %s4769_s23  ;;  %26 = sbr.rel (!%p24_p3) target bundleno = 11 (0xb), region = 121 }
 0x3c9   :  { %3204 = vsyncpa [#allocation3], 1 }
 0x3ca   :  { %3206 = vsyncpa [#allocation3 + $0x1], 1 }
 0x3cb   :  { %3207 = vsyncpa [#allocation6], 1 }
 0x3cc   :  { %3208 = vsyncpa [#allocation9], 1 }
 0x3cd   :  { %3209 = vsyncpa [#allocation12], 1 }
 0x3ce   :  { %3210 = vsyncpa [#allocation4], 1 }
 0x3cf   :  { %3212 = vsyncpa [#allocation4 + $0x1], 1 }

</bundles_post_ra>
